<compile_context>
chip_gen: v6e
topology: v6e:2x2x1
jax: 0.10.0
libtpu: 0.0.40
codegen_flags: <defaults>
</compile_context>

<pallas_src>
import jax
import jax.numpy as jnp
from jax.experimental import pallas as pl
from jax.experimental.pallas import tpu as pltpu

QUANTSCALE = 0.25  # BitQuant default; calibrated_{activation,weight}_scale stay 1.0


def _weight_quant(w):
    """BitQuant.weight_quant forward value (4bitsym, PerTensor, scale=1.0)."""
    s = QUANTSCALE * 8.0
    u = jnp.clip(jnp.round(w * s - 0.5), -8.0, 7.0) + 0.5
    return (u / s).astype(jnp.float32)


def _make_kernel(h2, w2):
    """Per-batch QAttentionCondenser kernel, closed over the condensed grid."""
    s2 = h2 * w2

    def norm_quant(v):
        # v: (S2, Cv) activation at condensed resolution (row = h2*W2 + w2).
        # RMS norm per channel over spatial, then 4bitsym activation quant with
        # per-(channel, h2) |max| over the W2 columns of that image row.
        inv_rms = jax.lax.rsqrt(jnp.mean(v * v, axis=0, keepdims=True))        # (1, Cv)  EUP
        xn = (v * inv_rms).reshape(h2, w2, v.shape[1])                          # sublane split
        mag = jnp.maximum(jnp.max(jnp.abs(xn), axis=1, keepdims=True), 1e-5)    # (h2, 1, Cv)
        scl = 8.0 / mag                                                         # tiny divide
        xq = jnp.clip(jnp.round(xn * scl), -8.0, 7.0) * (mag * 0.125)           # STE forward
        return xq.reshape(s2, v.shape[1])

    def kernel(x_ref, gw_ref, pw_ref, ew_ref, scale_ref, out_ref):
        # x_ref / out_ref: (1, 4, S2, Cin) — the four 2x2 spatial phases.
        # gw_ref: (Cin, mid), pw_ref: (mid, out), ew_ref: (out, Cin): transposed,
        # PRE-QUANTIZED 1x1 conv weights.  scale_ref: (1,) BitParameter in SMEM.
        x = x_ref[0]                                                            # (4, S2, Cin)

        # ---- condense: MaxPool2d(kernel_size=2, stride=2) ----
        q = jnp.maximum(jnp.maximum(x[0], x[1]), jnp.maximum(x[2], x[3]))       # (S2, Cin)

        # ---- group_conv (1x1) + ReLU, pointwise_conv (1x1) + ReLU ----
        k = jnp.maximum(jnp.dot(norm_quant(q), gw_ref[...],
                                preferred_element_type=jnp.float32), 0.0)       # (S2, mid)
        k = jnp.maximum(jnp.dot(norm_quant(k), pw_ref[...],
                                preferred_element_type=jnp.float32), 0.0)       # (S2, out)

        # ---- expand_conv (1x1) at condensed resolution + sigmoid ----
        # (nearest-2x upsample preserves both the spatial RMS and the per-row
        #  |max|, so computing at condensed resolution and broadcasting the gate
        #  to all four phases is exact.)
        a = jnp.dot(norm_quant(k), ew_ref[...], preferred_element_type=jnp.float32)
        s = pl.reciprocal(1.0 + jnp.exp(-a), approx=True)                       # sigmoid, EUP

        # ---- V' = residual * S * scale + residual ----
        gate = s * scale_ref[0] + 1.0                                           # (S2, Cin)
        out_ref[0] = x * gate[None, :, :]

    return kernel


@jax.jit
def qattention_condenser(x, gw, pw, ew, scale):
    """x: (B, Cin, H, W) NCHW float32.  gw: (mid, Cin), pw: (out, mid),
    ew: (Cin, out) are the squeezed 1x1 conv weights.  scale: (1,) parameter."""
    B, C, H, W = x.shape
    H2, W2 = H // 2, W // 2
    S2 = H2 * W2
    mid, outc = gw.shape[0], pw.shape[0]

    # glue in: NCHW -> (B, 4, S2, C), phase p = 2*i + j, single reshape+transpose
    x_ph = jnp.transpose(x.reshape(B, C, H2, 2, W2, 2),
                         (0, 3, 5, 2, 4, 1)).reshape(B, 4, S2, C)

    # hoisted, batch-invariant 4bitsym weight quantization (done once, in XLA)
    gw_t = jnp.transpose(_weight_quant(gw))                     # (Cin, mid)
    pw_t = jnp.transpose(_weight_quant(pw))                     # (mid, out)
    ew_t = jnp.transpose(_weight_quant(ew))                     # (out, Cin)
    scale_arr = jnp.reshape(scale, (1,)).astype(jnp.float32)

    blk = pl.BlockSpec((1, 4, S2, C), lambda b: (b, 0, 0, 0))
    out4 = pl.pallas_call(
        _make_kernel(H2, W2),
        grid=(B,),
        in_specs=[blk,
                  pl.BlockSpec((C, mid), lambda b: (0, 0)),
                  pl.BlockSpec((mid, outc), lambda b: (0, 0)),
                  pl.BlockSpec((outc, C), lambda b: (0, 0)),
                  pl.BlockSpec(memory_space=pltpu.MemorySpace.SMEM)],
        out_specs=blk,
        out_shape=jax.ShapeDtypeStruct((B, 4, S2, C), jnp.float32),
        compiler_params=pltpu.CompilerParams(
            dimension_semantics=("parallel",),
            vmem_limit_bytes=32 * 1024 * 1024),
    )(x_ph.astype(jnp.float32), gw_t, pw_t, ew_t, scale_arr)

    # glue out: (B, 4, S2, C) -> NCHW, single reshape+transpose
    out = jnp.transpose(out4.reshape(B, 2, 2, H2, W2, C),
                        (0, 5, 3, 1, 4, 2)).reshape(B, C, H, W)
    return out.astype(x.dtype)


# ----------------------- pure-JAX reference (PyTorch semantics) ----------------
def _bitconv_ref(x, w):
    rms = jnp.sqrt(jnp.mean(x * x, axis=(-2, -1), keepdims=True))
    xn = x / rms
    mag = jnp.maximum(jnp.max(jnp.abs(xn), axis=-1, keepdims=True), 1e-5)
    scl = 8.0 / mag
    xq = jnp.clip(jnp.round(xn * scl), -8.0, 7.0) / scl
    ws = QUANTSCALE * 8.0
    wq = (jnp.clip(jnp.round(w * ws - 0.5), -8.0, 7.0) + 0.5) / ws
    return jnp.einsum("bchw,oc->bohw", xq, wq,
                      precision=jax.lax.Precision.HIGHEST)


def reference_forward(x, gw, pw, ew, scale):
    B, C, H, W = x.shape
    q = x.reshape(B, C, H // 2, 2, W // 2, 2).max(axis=(3, 5))     # MaxPool2d(2,2)
    k = jax.nn.relu(_bitconv_ref(q, gw))                           # group_conv
    k = jax.nn.relu(_bitconv_ref(k, pw))                           # pointwise_conv
    a = jnp.repeat(jnp.repeat(k, 2, axis=2), 2, axis=3)            # nearest x2
    a = _bitconv_ref(a, ew)                                        # expand_conv
    s = 1.0 / (1.0 + jnp.exp(-a))                                  # sigmoid
    return x * s * scale + x


if __name__ == "__main__":
    B, Cin, H, W = 2, 4, 16, 16
    mid, outc = 8, 4

    key = jax.random.PRNGKey(0)
    kx, kg, kp, ke, ks = jax.random.split(key, 5)
    x = jax.random.normal(kx, (B, Cin, H, W), jnp.float32)
    # deterministic synthetic parameters (1x1 conv weights squeezed to 2-D)
    gw = 0.5 * jax.random.normal(kg, (mid, Cin), jnp.float32)      # group_conv.weight
    pw = 0.5 * jax.random.normal(kp, (outc, mid), jnp.float32)     # pointwise_conv.weight
    ew = 0.5 * jax.random.normal(ke, (Cin, outc), jnp.float32)     # expand_conv.weight
    scale = 0.7 + 0.1 * jax.random.normal(ks, (1,), jnp.float32)   # BitParameter (1,)

    out = jax.block_until_ready(qattention_condenser(x, gw, pw, ew, scale))

    ref = reference_forward(x, gw, pw, ew, scale)
    assert out.shape == x.shape and out.dtype == x.dtype
    err = float(jnp.max(jnp.abs(out - ref)))
    if err > 1e-2:
        raise SystemExit(f"mismatch vs reference: max abs err = {err}")
    print("KERNEL_OK")
</pallas_src>

<mosaic_0001>
module attributes {stable_mosaic.version = 11 : i64} {
  func.func @kernel(%arg0: i32, %arg1: memref<1x4x64x4xf32, #tpu.memory_space<vmem>>, %arg2: memref<4x8xf32, #tpu.memory_space<vmem>>, %arg3: memref<8x4xf32, #tpu.memory_space<vmem>>, %arg4: memref<4x4xf32, #tpu.memory_space<vmem>>, %arg5: memref<1xf32, #tpu.memory_space<smem>>, %arg6: memref<1x4x64x4xf32, #tpu.memory_space<vmem>>) attributes {dimension_semantics = [#tpu.dimension_semantics<parallel>], iteration_bounds = array<i64: 2>, scalar_prefetch = 0 : i64, scratch_operands = 0 : i64, tpu.core_type = #tpu.core_type<tc>, window_params = [{transform_indices = @transform_0, window_bounds = array<i64: 1, 4, 64, 4>}, {pipeline_mode = #tpu.pipeline_mode<synchronous>, transform_indices = @transform_1, window_bounds = array<i64: 4, 8>}, {pipeline_mode = #tpu.pipeline_mode<synchronous>, transform_indices = @transform_2, window_bounds = array<i64: 8, 4>}, {pipeline_mode = #tpu.pipeline_mode<synchronous>, transform_indices = @transform_3, window_bounds = array<i64: 4, 4>}, {transform_indices = @transform_4, window_bounds = array<i64: 1>}, {transform_indices = @transform_5, window_bounds = array<i64: 1, 4, 64, 4>}]} {
    %c0 = arith.constant 0 : index
    %c0_0 = arith.constant 0 : index
    %c0_1 = arith.constant 0 : index
    %c0_2 = arith.constant 0 : index
    %0 = vector.load %arg1[%c0, %c0_0, %c0_1, %c0_2] : memref<1x4x64x4xf32, #tpu.memory_space<vmem>>, vector<1x4x64x4xf32>
    %1 = vector.shape_cast %0 : vector<1x4x64x4xf32> to vector<4x64x4xf32>
    %2 = vector.extract_strided_slice %1 {offsets = [0, 0, 0], sizes = [1, 64, 4], strides = [1, 1, 1]} : vector<4x64x4xf32> to vector<1x64x4xf32>
    %3 = vector.shape_cast %2 : vector<1x64x4xf32> to vector<64x4xf32>
    %4 = vector.extract_strided_slice %1 {offsets = [1, 0, 0], sizes = [1, 64, 4], strides = [1, 1, 1]} : vector<4x64x4xf32> to vector<1x64x4xf32>
    %5 = vector.shape_cast %4 : vector<1x64x4xf32> to vector<64x4xf32>
    %6 = arith.maximumf %3, %5 : vector<64x4xf32>
    %7 = vector.extract_strided_slice %1 {offsets = [2, 0, 0], sizes = [1, 64, 4], strides = [1, 1, 1]} : vector<4x64x4xf32> to vector<1x64x4xf32>
    %8 = vector.shape_cast %7 : vector<1x64x4xf32> to vector<64x4xf32>
    %9 = vector.extract_strided_slice %1 {offsets = [3, 0, 0], sizes = [1, 64, 4], strides = [1, 1, 1]} : vector<4x64x4xf32> to vector<1x64x4xf32>
    %10 = vector.shape_cast %9 : vector<1x64x4xf32> to vector<64x4xf32>
    %11 = arith.maximumf %8, %10 : vector<64x4xf32>
    %12 = arith.maximumf %6, %11 : vector<64x4xf32>
    %13 = arith.mulf %12, %12 : vector<64x4xf32>
    %cst = arith.constant dense<0.000000e+00> : vector<4xf32>
    %14 = vector.multi_reduction <add>, %13, %cst [0] : vector<64x4xf32> to vector<4xf32>
    %15 = vector.shape_cast %14 : vector<4xf32> to vector<1x4xf32>
    %cst_3 = arith.constant 6.400000e+01 : f32
    %16 = vector.broadcast %cst_3 : f32 to vector<1x4xf32>
    %17 = arith.divf %15, %16 : vector<1x4xf32>
    %18 = math.rsqrt %17 : vector<1x4xf32>
    %19 = vector.broadcast %18 : vector<1x4xf32> to vector<64x4xf32>
    %20 = arith.mulf %12, %19 : vector<64x4xf32>
    %21 = vector.shape_cast %20 : vector<64x4xf32> to vector<8x8x4xf32>
    %22 = math.absf %21 : vector<8x8x4xf32>
    %cst_4 = arith.constant dense<0xFF800000> : vector<8x4xf32>
    %23 = vector.multi_reduction <maximumf>, %22, %cst_4 [1] : vector<8x8x4xf32> to vector<8x4xf32>
    %24 = vector.shape_cast %23 : vector<8x4xf32> to vector<8x1x4xf32>
    %cst_5 = arith.constant 9.99999974E-6 : f32
    %25 = vector.broadcast %cst_5 : f32 to vector<8x1x4xf32>
    %26 = arith.maximumf %24, %25 : vector<8x1x4xf32>
    %cst_6 = arith.constant 8.000000e+00 : f32
    %27 = vector.broadcast %cst_6 : f32 to vector<8x1x4xf32>
    %28 = arith.divf %27, %26 : vector<8x1x4xf32>
    %29 = vector.broadcast %28 : vector<8x1x4xf32> to vector<8x8x4xf32>
    %30 = arith.mulf %21, %29 : vector<8x8x4xf32>
    %31 = math.roundeven %30 : vector<8x8x4xf32>
    %cst_7 = arith.constant -8.000000e+00 : f32
    %cst_8 = arith.constant 7.000000e+00 : f32
    %32 = vector.broadcast %cst_7 : f32 to vector<8x8x4xf32>
    %33 = arith.maximumf %32, %31 : vector<8x8x4xf32>
    %34 = vector.broadcast %cst_8 : f32 to vector<8x8x4xf32>
    %35 = arith.minimumf %34, %33 : vector<8x8x4xf32>
    %cst_9 = arith.constant 1.250000e-01 : f32
    %36 = vector.broadcast %cst_9 : f32 to vector<8x1x4xf32>
    %37 = arith.mulf %26, %36 : vector<8x1x4xf32>
    %38 = vector.broadcast %37 : vector<8x1x4xf32> to vector<8x8x4xf32>
    %39 = arith.mulf %35, %38 : vector<8x8x4xf32>
    %40 = vector.shape_cast %39 : vector<8x8x4xf32> to vector<64x4xf32>
    %c0_10 = arith.constant 0 : index
    %c0_11 = arith.constant 0 : index
    %41 = vector.load %arg2[%c0_10, %c0_11] : memref<4x8xf32, #tpu.memory_space<vmem>>, vector<4x8xf32>
    %cst_12 = arith.constant dense<0.000000e+00> : vector<64x8xf32>
    %42 = tpu.matmul %40, %41, %cst_12 {dimension_numbers = #tpu.dot_dimension_numbers<[1], [0], [0], [1], [0, 0, 1, 1], [], []>} : vector<64x4xf32>, vector<4x8xf32>, vector<64x8xf32> -> vector<64x8xf32>
    %cst_13 = arith.constant 0.000000e+00 : f32
    %43 = vector.broadcast %cst_13 : f32 to vector<64x8xf32>
    %44 = arith.maximumf %42, %43 : vector<64x8xf32>
    %45 = arith.mulf %44, %44 : vector<64x8xf32>
    %cst_14 = arith.constant dense<0.000000e+00> : vector<8xf32>
    %46 = vector.multi_reduction <add>, %45, %cst_14 [0] : vector<64x8xf32> to vector<8xf32>
    %47 = vector.shape_cast %46 : vector<8xf32> to vector<1x8xf32>
    %cst_15 = arith.constant 6.400000e+01 : f32
    %48 = vector.broadcast %cst_15 : f32 to vector<1x8xf32>
    %49 = arith.divf %47, %48 : vector<1x8xf32>
    %50 = math.rsqrt %49 : vector<1x8xf32>
    %51 = vector.broadcast %50 : vector<1x8xf32> to vector<64x8xf32>
    %52 = arith.mulf %44, %51 : vector<64x8xf32>
    %53 = vector.shape_cast %52 : vector<64x8xf32> to vector<8x8x8xf32>
    %54 = math.absf %53 : vector<8x8x8xf32>
    %cst_16 = arith.constant dense<0xFF800000> : vector<8x8xf32>
    %55 = vector.multi_reduction <maximumf>, %54, %cst_16 [1] : vector<8x8x8xf32> to vector<8x8xf32>
    %56 = vector.shape_cast %55 : vector<8x8xf32> to vector<8x1x8xf32>
    %cst_17 = arith.constant 9.99999974E-6 : f32
    %57 = vector.broadcast %cst_17 : f32 to vector<8x1x8xf32>
    %58 = arith.maximumf %56, %57 : vector<8x1x8xf32>
    %cst_18 = arith.constant 8.000000e+00 : f32
    %59 = vector.broadcast %cst_18 : f32 to vector<8x1x8xf32>
    %60 = arith.divf %59, %58 : vector<8x1x8xf32>
    %61 = vector.broadcast %60 : vector<8x1x8xf32> to vector<8x8x8xf32>
    %62 = arith.mulf %53, %61 : vector<8x8x8xf32>
    %63 = math.roundeven %62 : vector<8x8x8xf32>
    %cst_19 = arith.constant -8.000000e+00 : f32
    %cst_20 = arith.constant 7.000000e+00 : f32
    %64 = vector.broadcast %cst_19 : f32 to vector<8x8x8xf32>
    %65 = arith.maximumf %64, %63 : vector<8x8x8xf32>
    %66 = vector.broadcast %cst_20 : f32 to vector<8x8x8xf32>
    %67 = arith.minimumf %66, %65 : vector<8x8x8xf32>
    %cst_21 = arith.constant 1.250000e-01 : f32
    %68 = vector.broadcast %cst_21 : f32 to vector<8x1x8xf32>
    %69 = arith.mulf %58, %68 : vector<8x1x8xf32>
    %70 = vector.broadcast %69 : vector<8x1x8xf32> to vector<8x8x8xf32>
    %71 = arith.mulf %67, %70 : vector<8x8x8xf32>
    %72 = vector.shape_cast %71 : vector<8x8x8xf32> to vector<64x8xf32>
    %c0_22 = arith.constant 0 : index
    %c0_23 = arith.constant 0 : index
    %73 = vector.load %arg3[%c0_22, %c0_23] : memref<8x4xf32, #tpu.memory_space<vmem>>, vector<8x4xf32>
    %cst_24 = arith.constant dense<0.000000e+00> : vector<64x4xf32>
    %74 = tpu.matmul %72, %73, %cst_24 {dimension_numbers = #tpu.dot_dimension_numbers<[1], [0], [0], [1], [0, 0, 1, 1], [], []>} : vector<64x8xf32>, vector<8x4xf32>, vector<64x4xf32> -> vector<64x4xf32>
    %cst_25 = arith.constant 0.000000e+00 : f32
    %75 = vector.broadcast %cst_25 : f32 to vector<64x4xf32>
    %76 = arith.maximumf %74, %75 : vector<64x4xf32>
    %77 = arith.mulf %76, %76 : vector<64x4xf32>
    %cst_26 = arith.constant dense<0.000000e+00> : vector<4xf32>
    %78 = vector.multi_reduction <add>, %77, %cst_26 [0] : vector<64x4xf32> to vector<4xf32>
    %79 = vector.shape_cast %78 : vector<4xf32> to vector<1x4xf32>
    %cst_27 = arith.constant 6.400000e+01 : f32
    %80 = vector.broadcast %cst_27 : f32 to vector<1x4xf32>
    %81 = arith.divf %79, %80 : vector<1x4xf32>
    %82 = math.rsqrt %81 : vector<1x4xf32>
    %83 = vector.broadcast %82 : vector<1x4xf32> to vector<64x4xf32>
    %84 = arith.mulf %76, %83 : vector<64x4xf32>
    %85 = vector.shape_cast %84 : vector<64x4xf32> to vector<8x8x4xf32>
    %86 = math.absf %85 : vector<8x8x4xf32>
    %cst_28 = arith.constant dense<0xFF800000> : vector<8x4xf32>
    %87 = vector.multi_reduction <maximumf>, %86, %cst_28 [1] : vector<8x8x4xf32> to vector<8x4xf32>
    %88 = vector.shape_cast %87 : vector<8x4xf32> to vector<8x1x4xf32>
    %cst_29 = arith.constant 9.99999974E-6 : f32
    %89 = vector.broadcast %cst_29 : f32 to vector<8x1x4xf32>
    %90 = arith.maximumf %88, %89 : vector<8x1x4xf32>
    %cst_30 = arith.constant 8.000000e+00 : f32
    %91 = vector.broadcast %cst_30 : f32 to vector<8x1x4xf32>
    %92 = arith.divf %91, %90 : vector<8x1x4xf32>
    %93 = vector.broadcast %92 : vector<8x1x4xf32> to vector<8x8x4xf32>
    %94 = arith.mulf %85, %93 : vector<8x8x4xf32>
    %95 = math.roundeven %94 : vector<8x8x4xf32>
    %cst_31 = arith.constant -8.000000e+00 : f32
    %cst_32 = arith.constant 7.000000e+00 : f32
    %96 = vector.broadcast %cst_31 : f32 to vector<8x8x4xf32>
    %97 = arith.maximumf %96, %95 : vector<8x8x4xf32>
    %98 = vector.broadcast %cst_32 : f32 to vector<8x8x4xf32>
    %99 = arith.minimumf %98, %97 : vector<8x8x4xf32>
    %cst_33 = arith.constant 1.250000e-01 : f32
    %100 = vector.broadcast %cst_33 : f32 to vector<8x1x4xf32>
    %101 = arith.mulf %90, %100 : vector<8x1x4xf32>
    %102 = vector.broadcast %101 : vector<8x1x4xf32> to vector<8x8x4xf32>
    %103 = arith.mulf %99, %102 : vector<8x8x4xf32>
    %104 = vector.shape_cast %103 : vector<8x8x4xf32> to vector<64x4xf32>
    %c0_34 = arith.constant 0 : index
    %c0_35 = arith.constant 0 : index
    %105 = vector.load %arg4[%c0_34, %c0_35] : memref<4x4xf32, #tpu.memory_space<vmem>>, vector<4x4xf32>
    %cst_36 = arith.constant dense<0.000000e+00> : vector<64x4xf32>
    %106 = tpu.matmul %104, %105, %cst_36 {dimension_numbers = #tpu.dot_dimension_numbers<[1], [0], [0], [1], [0, 0, 1, 1], [], []>} : vector<64x4xf32>, vector<4x4xf32>, vector<64x4xf32> -> vector<64x4xf32>
    %cst_37 = arith.constant 0.000000e+00 : f32
    %107 = vector.broadcast %cst_37 : f32 to vector<64x4xf32>
    %108 = arith.subf %107, %106 : vector<64x4xf32>
    %109 = math.exp %108 : vector<64x4xf32>
    %cst_38 = arith.constant 1.000000e+00 : f32
    %110 = vector.broadcast %cst_38 : f32 to vector<64x4xf32>
    %111 = arith.addf %110, %109 : vector<64x4xf32>
    %112 = tpu.reciprocal %111 {approx = true} : vector<64x4xf32> -> vector<64x4xf32>
    %c0_39 = arith.constant 0 : index
    %113 = memref.load %arg5[%c0_39] : memref<1xf32, #tpu.memory_space<smem>>
    %114 = vector.broadcast %113 : f32 to vector<64x4xf32>
    %115 = arith.mulf %112, %114 : vector<64x4xf32>
    %cst_40 = arith.constant 1.000000e+00 : f32
    %116 = vector.broadcast %cst_40 : f32 to vector<64x4xf32>
    %117 = arith.addf %115, %116 : vector<64x4xf32>
    %118 = vector.shape_cast %117 : vector<64x4xf32> to vector<1x64x4xf32>
    %119 = vector.broadcast %118 : vector<1x64x4xf32> to vector<4x64x4xf32>
    %120 = arith.mulf %1, %119 : vector<4x64x4xf32>
    %c0_41 = arith.constant 0 : index
    %c0_42 = arith.constant 0 : index
    %c0_43 = arith.constant 0 : index
    %c0_44 = arith.constant 0 : index
    %121 = vector.load %arg6[%c0_41, %c0_42, %c0_43, %c0_44] : memref<1x4x64x4xf32, #tpu.memory_space<vmem>>, vector<1x4x64x4xf32>
    %122 = vector.shape_cast %121 : vector<1x4x64x4xf32> to vector<4x64x4xf32>
    %123 = vector.shape_cast %120 : vector<4x64x4xf32> to vector<1x4x64x4xf32>
    tpu.vector_store %arg6[%c0_41, %c0_42, %c0_43, %c0_44], %123 {strides = array<i32>} : memref<1x4x64x4xf32, #tpu.memory_space<vmem>>, vector<1x4x64x4xf32>,
    return
  }
  func.func @transform_0(%arg0: i32) -> (i32, i32, i32, i32) {
    %c0_i32 = arith.constant 0 : i32
    %c0_i32_0 = arith.constant 0 : i32
    %c0_i32_1 = arith.constant 0 : i32
    %c0_i32_2 = arith.constant 0 : i32
    return %arg0, %c0_i32, %c0_i32_0, %c0_i32_1 : i32, i32, i32, i32
  }
  func.func @transform_1(%arg0: i32) -> (i32, i32) {
    %c0_i32 = arith.constant 0 : i32
    %c0_i32_0 = arith.constant 0 : i32
    %c0_i32_1 = arith.constant 0 : i32
    return %c0_i32, %c0_i32_0 : i32, i32
  }
  func.func @transform_2(%arg0: i32) -> (i32, i32) {
    %c0_i32 = arith.constant 0 : i32
    %c0_i32_0 = arith.constant 0 : i32
    %c0_i32_1 = arith.constant 0 : i32
    return %c0_i32, %c0_i32_0 : i32, i32
  }
  func.func @transform_3(%arg0: i32) -> (i32, i32) {
    %c0_i32 = arith.constant 0 : i32
    %c0_i32_0 = arith.constant 0 : i32
    %c0_i32_1 = arith.constant 0 : i32
    return %c0_i32, %c0_i32_0 : i32, i32
  }
  func.func @transform_4(%arg0: i32) -> i32 {
    %c0_i32 = arith.constant 0 : i32
    %c0_i32_0 = arith.constant 0 : i32
    return %c0_i32 : i32
  }
  func.func @transform_5(%arg0: i32) -> (i32, i32, i32, i32) {
    %c0_i32 = arith.constant 0 : i32
    %c0_i32_0 = arith.constant 0 : i32
    %c0_i32_1 = arith.constant 0 : i32
    %c0_i32_2 = arith.constant 0 : i32
    return %arg0, %c0_i32, %c0_i32_0, %c0_i32_1 : i32, i32, i32, i32
  }
}

</mosaic_0001>

<bundles_post_ra>
// kernel: qattention_condenser.1
= control target key start
LH: loop header
LB: loop body
LE: loop exit
PB: predicated region body
PF: predicated region fallthrough
CT: control target
= control target key end

     0   :  { %s1869_s20 = smov 0   ;;  %s2391_s0 = inlined_call_operand.vmem [shape: f32[2,4,64,4], index: 0, kind: input, shape index: {}]   ;;  %s2392_s1 = inlined_call_operand.vmem [shape: f32[4,8], index: 1, kind: input, shape index: {}]   ;;  %s2393_s2 = inlined_call_operand.vmem [shape: f32[8,4], index: 2, kind: input, shape index: {}]   ;;  %s2394_s3 = inlined_call_operand.vmem [shape: f32[4,4], index: 3, kind: input, shape index: {}]   ;;  %s2395_s4 = inlined_call_operand.<no memory space> [shape: f32[1], index: 4, kind: input, shape index: {}]   ;;  %s2396_s5 = inlined_call_operand.vmem [shape: f32[2,4,64,4], index: 5, kind: output, shape index: {}]  }
   0x1   :  { %10 = sst [smem:[#allocation2]] %s2395_s4 }
   0x2 LB: > { %s1400_s21 = sadd.s32 4294967295, %s1834_s20   ;;  %p1404_p0 = scmp.ge.s32.totalorder %s1834_s20, 1  ;;  %s1834_s20 = sphi %s1869_s20, %s16_s20  }
   0x3   : > { %p188_p1 = scmp.lt.s32.totalorder %s1834_s20, 3 }
   0x5   : > { %p189_p2 = pnand %p1404_p0, %p188_p1 }
   0x6   : > { %p216_p3 = scmp.lt.s32.totalorder (!%p189_p2), %s1400_s21, 1  ;;  %s1263_s6 = sld [smem:[#allocation2]] (!%p189_p2) }
   0x7   : > { %192 = sbr.rel (%p189_p2) target bundleno = 990 (0x3de), region = 40 }
   0xc   : > { %v459_v0 = vld [vmem:[%s2392_s1] sm:$0xf]  ;;  %vm484_vm0 = vcmask 1043456   ;;  %s2416_s21 = smov (!%p216_p3, %s1400_s21), 1  ;;  %vm290_vm1 = vcmask 31744   ;;  %vm609_vm10 = vcmask 64512  }
   0xd   : > { %1466 = vmatprep.subr.msk.mxu0 %vm484_vm0, %v459_v0  ;;  %1508 = vmatprep.subr.msk.mxu1 %vm484_vm0, %v459_v0  ;;  %s1437_s4 = sshll.u32 %s2416_s21, 8 }
   0xe   : > { %1467 = vmatpush3.msk.msra.mxu0 %vm484_vm0, %v459_v0  ;;  %1509 = vmatpush3.msk.msra.mxu1 %vm484_vm0, %v459_v0  ;;  %s1892_s26 = scalar_lea.vmem %s2391_s0, %s1437_s4  ;;  %s2284_s9 = scalar_lea.vmem %s2396_s5, %s1437_s4 }
   0xf   : > { %v226_v1 = vld [vmem:[%s1892_s26] sm:$0xff]  ;;  %v227_v2 = vld [vmem:[%s1892_s26 + $0x8] sm:$0xff]  ;;  %v228_v3 = vld [vmem:[%s1892_s26 + $0x10] sm:$0xff] }
  0x10   : > { %v229_v4 = vld [vmem:[%s1892_s26 + $0x18] sm:$0xff]  ;;  %v230_v5 = vld [vmem:[%s1892_s26 + $0x20] sm:$0xff]  ;;  %v231_v7 = vld [vmem:[%s1892_s26 + $0x28] sm:$0xff] }
  0x11   : > { %v234_v6 = vld [vmem:[%s1892_s26 + $0x40] sm:$0xff]  ;;  %v235_v8 = vld [vmem:[%s1892_s26 + $0x48] sm:$0xff]  ;;  %v236_v9 = vld [vmem:[%s1892_s26 + $0x50] sm:$0xff] }
  0x12   : > { %v237_v10 = vld [vmem:[%s1892_s26 + $0x58] sm:$0xff]  ;;  %v238_v11 = vld [vmem:[%s1892_s26 + $0x60] sm:$0xff]  ;;  %v239_v12 = vld [vmem:[%s1892_s26 + $0x68] sm:$0xff]  ;;  %v258_v24 = vmax.f32 %v226_v1, %v234_v6  ;;  %v259_v25 = vmax.f32 %v227_v2, %v235_v8  ;;  %v260_v29 = vmax.f32 %v228_v3, %v236_v9 }
  0x13   : > { %v242_v13 = vld [vmem:[%s1892_s26 + $0x80] sm:$0xff]  ;;  %v232_v14 = vld [vmem:[%s1892_s26 + $0x30] sm:$0xff]  ;;  %v243_v16 = vld [vmem:[%s1892_s26 + $0x88] sm:$0xff]  ;;  %v261_v30 = vmax.f32 %v229_v4, %v237_v10  ;;  %v262_v31 = vmax.f32 %v230_v5, %v238_v11  ;;  %v263_v35 = vmax.f32 %v231_v7, %v239_v12 }
  0x14   : > { %v240_v15 = vld [vmem:[%s1892_s26 + $0x70] sm:$0xff]  ;;  %v245_v18 = vld [vmem:[%s1892_s26 + $0x98] sm:$0xff]  ;;  %v246_v21 = vld [vmem:[%s1892_s26 + $0xa0] sm:$0xff] }
  0x15   : > { %v244_v17 = vld [vmem:[%s1892_s26 + $0x90] sm:$0xff]  ;;  %v233_v19 = vld [vmem:[%s1892_s26 + $0x38] sm:$0xff]  ;;  %v247_v22 = vld [vmem:[%s1892_s26 + $0xa8] sm:$0xff]  ;;  %v264_v45 = vmax.f32 %v232_v14, %v240_v15 }
  0x16   : > { %v241_v20 = vld [vmem:[%s1892_s26 + $0x78] sm:$0xff]  ;;  %v248_v23 = vld [vmem:[%s1892_s26 + $0xb0] sm:$0xff]  ;;  %v250_v26 = vld [vmem:[%s1892_s26 + $0xc0] sm:$0xff] }
  0x17   : > { %v251_v27 = vld [vmem:[%s1892_s26 + $0xc8] sm:$0xff]  ;;  %v252_v28 = vld [vmem:[%s1892_s26 + $0xd0] sm:$0xff]  ;;  %v253_v32 = vld [vmem:[%s1892_s26 + $0xd8] sm:$0xff]  ;;  %v266_v36 = vmax.f32 %v242_v13, %v250_v26  ;;  %v265_v49 = vmax.f32 %v233_v19, %v241_v20 }
  0x18   : > { %v254_v33 = vld [vmem:[%s1892_s26 + $0xe0] sm:$0xff]  ;;  %v255_v34 = vld [vmem:[%s1892_s26 + $0xe8] sm:$0xff]  ;;  %v267_v37 = vmax.f32 %v243_v16, %v251_v27  ;;  %v268_v38 = vmax.f32 %v244_v17, %v252_v28  ;;  %v249_v39 = vld [vmem:[%s1892_s26 + $0xb8] sm:$0xff]  ;;  %v269_v42 = vmax.f32 %v245_v18, %v253_v32 }
  0x19   : > { %v256_v40 = vld [vmem:[%s1892_s26 + $0xf0] sm:$0xff]  ;;  %v257_v41 = vld [vmem:[%s1892_s26 + $0xf8] sm:$0xff]  ;;  %v270_v43 = vmax.f32 %v246_v21, %v254_v33  ;;  %v271_v44 = vmax.f32 %v247_v22, %v255_v34  ;;  %v274_v47 = vmax.f32 %v258_v24, %v266_v36 }
  0x1a   : > { %v272_v46 = vmax.f32 %v248_v23, %v256_v40  ;;  %v275_v48 = vmax.f32 %v259_v25, %v267_v37  ;;  %v276_v50 = vmax.f32 %v260_v29, %v268_v38  ;;  %v277_v51 = vmax.f32 %v261_v30, %v269_v42 }
  0x1b   : > { %v278_v52 = vmax.f32 %v262_v31, %v270_v43  ;;  %v273_v53 = vmax.f32 %v249_v39, %v257_v41  ;;  %v279_v54 = vmax.f32 %v263_v35, %v271_v44  ;;  %v282_v55 = vmul.f32 %v274_v47, %v274_v47 }
  0x1c   : > { %v283_v56 = vmul.f32 %v275_v48, %v275_v48  ;;  %v284_v57 = vmul.f32 %v276_v50, %v276_v50  ;;  %v285_v58 = vmul.f32 %v277_v51, %v277_v51  ;;  %v280_v59 = vmax.f32 %v264_v45, %v272_v46 }
  0x1d   : > { %v286_v60 = vmul.f32 %v278_v52, %v278_v52  ;;  %v291_v61 = vsel %vm290_vm1, %v282_v55, 0.0  ;;  %v281_v1 = vmax.f32 %v265_v49, %v273_v53  ;;  %v287_v2 = vmul.f32 %v279_v54, %v279_v54 }
  0x1e   : > { %v292_v62 = vsel %vm290_vm1, %v283_v56, 0.0  ;;  %v294_v0 = vsel %vm290_vm1, %v284_v57, 0.0  ;;  %v296_v3 = vsel %vm290_vm1, %v285_v58, 0.0  ;;  %v288_v5 = vmul.f32 %v280_v59, %v280_v59 }
  0x1f   : > { %v293_v63 = vadd.f32 %v292_v62, %v291_v61  ;;  %v298_v6 = vsel %vm290_vm1, %v286_v60, 0.0  ;;  %v289_v8 = vmul.f32 %v281_v1, %v281_v1  ;;  %v300_v9 = vsel %vm290_vm1, %v287_v2, 0.0 }
  0x20   : > { %v302_v11 = vsel %vm290_vm1, %v288_v5, 0.0 }
  0x21   : > { %v295_v4 = vadd.f32 %v294_v0, %v293_v63  ;;  %v304_v13 = vsel %vm290_vm1, %v289_v8, 0.0 }
  0x23   : > { %v297_v7 = vadd.f32 %v296_v3, %v295_v4 }
  0x25   : > { %v299_v10 = vadd.f32 %v298_v6, %v297_v7 }
  0x27   : > { %v301_v12 = vadd.f32 %v300_v9, %v299_v10 }
  0x29   : > { %v303_v14 = vadd.f32 %v302_v11, %v301_v12 }
  0x2b   : > { %v305_v15 = vadd.f32 %v304_v13, %v303_v14 }
  0x2d   : > { %v306_v16 = vrot.slane %v305_v15, 4 }
  0x2f   : > { %v307_v17 = vadd.f32 %v306_v16, %v305_v15 }
  0x31   : > { %v308_v18 = vrot.slane %v307_v17, 2 }
  0x33   : > { %v309_v19 = vadd.f32 %v308_v18, %v307_v17 }
  0x35   : > { %v310_v20 = vrot.slane %v309_v19, 1 }
  0x37   : > { %v311_v21 = vadd.f32 %v310_v20, %v309_v19 }
  0x39   : > { %v313_v22 = vmul.f32 0.015625, %v311_v21 }
  0x3b   : > { %1710 = vrsqrt.f32 %v313_v22 }
  0x48   : > { %v1711_v23 = vpop.eup %1710 }
  0x49   : > { %v1934_v24 = vmul.f32 %v1711_v23, %v274_v47  ;;  %v1936_v25 = vmul.f32 %v1711_v23, %v275_v48  ;;  %v1938_v26 = vmul.f32 %v1711_v23, %v276_v50  ;;  %v1940_v27 = vmul.f32 %v1711_v23, %v277_v51 }
  0x4a   : > { %v1942_v28 = vmul.f32 %v1711_v23, %v278_v52  ;;  %v1944_v29 = vmul.f32 %v1711_v23, %v279_v54  ;;  %v1946_v30 = vmul.f32 %v1711_v23, %v280_v59  ;;  %v1954_v37 = vmul.f32 %v1711_v23, %v281_v1 }
  0x4b   : > { %v323_v31 = vand.u32 2147483647, %v1934_v24  ;;  %v324_v32 = vand.u32 2147483647, %v1936_v25  ;;  %v325_v33 = vand.u32 2147483647, %v1938_v26 }
  0x4c   : > { %v326_v34 = vand.u32 2147483647, %v1940_v27  ;;  %v327_v35 = vand.u32 2147483647, %v1942_v28  ;;  %v328_v36 = vand.u32 2147483647, %v1944_v29 }
  0x4d   : > { %v331_v38 = vsel %vm290_vm1, %v323_v31, -inf  ;;  %v338_v39 = vsel %vm290_vm1, %v324_v32, -inf  ;;  %v345_v40 = vsel %vm290_vm1, %v325_v33, -inf  ;;  %v329_v41 = vand.u32 2147483647, %v1946_v30 }
  0x4e   : > { %v332_v42 = vrot.slane %v331_v38, 4  ;;  %v339_v43 = vrot.slane %v338_v39, 4  ;;  %v346_v44 = vrot.slane %v345_v40, 4  ;;  %v352_v45 = vsel %vm290_vm1, %v326_v34, -inf }
  0x4f   : > { %v353_v46 = vrot.slane %v352_v45, 4  ;;  %v359_v47 = vsel %vm290_vm1, %v327_v35, -inf  ;;  %v366_v48 = vsel %vm290_vm1, %v328_v36, -inf  ;;  %v373_v49 = vsel %vm290_vm1, %v329_v41, -inf }
  0x50   : > { %v333_v50 = vmax.f32 %v331_v38, %v332_v42  ;;  %v340_v51 = vmax.f32 %v338_v39, %v339_v43  ;;  %v347_v52 = vmax.f32 %v345_v40, %v346_v44  ;;  %v360_v53 = vrot.slane %v359_v47, 4 }
  0x51   : > { %v354_v54 = vmax.f32 %v352_v45, %v353_v46  ;;  %v367_v55 = vrot.slane %v366_v48, 4  ;;  %v374_v56 = vrot.slane %v373_v49, 4  ;;  %v330_v57 = vand.u32 2147483647, %v1954_v37 }
  0x52   : > { %v334_v58 = vrot.slane %v333_v50, 2  ;;  %v341_v59 = vrot.slane %v340_v51, 2  ;;  %v348_v60 = vrot.slane %v347_v52, 2  ;;  %v361_v61 = vmax.f32 %v359_v47, %v360_v53 }
  0x53   : > { %v355_v62 = vrot.slane %v354_v54, 2  ;;  %v368_v63 = vmax.f32 %v366_v48, %v367_v55  ;;  %v375_v0 = vmax.f32 %v373_v49, %v374_v56  ;;  %v380_v1 = vsel %vm290_vm1, %v330_v57, -inf }
  0x54   : > { %v335_v2 = vmax.f32 %v333_v50, %v334_v58  ;;  %v342_v3 = vmax.f32 %v340_v51, %v341_v59  ;;  %v349_v4 = vmax.f32 %v347_v52, %v348_v60  ;;  %v362_v5 = vrot.slane %v361_v61, 2 }
  0x55   : > { %v356_v6 = vmax.f32 %v354_v54, %v355_v62  ;;  %v369_v7 = vrot.slane %v368_v63, 2  ;;  %v376_v8 = vrot.slane %v375_v0, 2  ;;  %v381_v9 = vrot.slane %v380_v1, 4 }
  0x56   : > { %v336_v10 = vrot.slane %v335_v2, 1  ;;  %v343_v11 = vrot.slane %v342_v3, 1  ;;  %v350_v12 = vrot.slane %v349_v4, 1  ;;  %v363_v13 = vmax.f32 %v361_v61, %v362_v5 }
  0x57   : > { %v357_v14 = vrot.slane %v356_v6, 1  ;;  %v370_v15 = vmax.f32 %v368_v63, %v369_v7  ;;  %v377_v16 = vmax.f32 %v375_v0, %v376_v8  ;;  %v382_v17 = vmax.f32 %v380_v1, %v381_v9 }
  0x58   : > { %v337_v18 = vmax.f32 %v335_v2, %v336_v10  ;;  %v344_v19 = vmax.f32 %v342_v3, %v343_v11  ;;  %v351_v20 = vmax.f32 %v349_v4, %v350_v12  ;;  %v364_v21 = vrot.slane %v363_v13, 1 }
  0x59   : > { %v358_v22 = vmax.f32 %v356_v6, %v357_v14  ;;  %v371_v23 = vrot.slane %v370_v15, 1  ;;  %v378_v31 = vrot.slane %v377_v16, 1  ;;  %v383_v32 = vrot.slane %v382_v17, 2 }
  0x5a   : > { %v387_v33 = vmax.f32 %v337_v18, 1e-05  ;;  %v388_v34 = vmax.f32 %v344_v19, 1e-05  ;;  %v389_v35 = vmax.f32 %v351_v20, 1e-05  ;;  %v1966_v38 = vmax.f32 %v363_v13, %v364_v21 }
  0x5b   : > { %v390_v36 = vmax.f32 %v358_v22, 1e-05  ;;  %v384_v39 = vmax.f32 %v382_v17, %v383_v32  ;;  %v1968_v40 = vmax.f32 %v370_v15, %v371_v23  ;;  %v1970_v41 = vmax.f32 %v377_v16, %v378_v31 }
  0x5c   : > { %1712 = vrcp.f32 %v387_v33  ;;  %v391_v43 = vmax.f32 %v1966_v38, 1e-05  ;;  %v443_v55 = vmul.f32 0.125, %v387_v33  ;;  %v1988_v58 = vmul.f32 0.125, %v388_v34 }
  0x5d   : > { %1714 = vrcp.f32 %v388_v34  ;;  %v385_v42 = vrot.slane %v384_v39, 1  ;;  %v392_v44 = vmax.f32 %v1968_v40, 1e-05  ;;  %v393_v46 = vmax.f32 %v1970_v41, 1e-05  ;;  %v777_v41 = vld [vmem:[%s2393_s2] sm:$0xff] }
  0x5e   : > { %1716 = vrcp.f32 %v389_v35  ;;  %v1990_v59 = vmul.f32 0.125, %v389_v35  ;;  %v1993_v0 = vmul.f32 0.125, %v390_v36  ;;  %1480 = vmatprep.subr.mxu1 %v777_v41 }
  0x5f   : > { %1718 = vrcp.f32 %v390_v36  ;;  %v1974_v45 = vmax.f32 %v384_v39, %v385_v42  ;;  %v449_v40 = vmul.f32 0.125, %v393_v46 }
  0x60   : > { %1720 = vrcp.f32 %v391_v43 }
  0x61   : > { %v394_v47 = vmax.f32 %v1974_v45, 1e-05  ;;  %1722 = vrcp.f32 %v392_v44 }
  0x62   : > { %1724 = vrcp.f32 %v393_v46 }
  0x63   : > { %1726 = vrcp.f32 %v394_v47 }
  0x69   : > { %v1713_v48 = vpop.eup %1712 }
  0x6a   : > { %v1715_v49 = vpop.eup %1714  ;;  %v396_v50 = vmul.f32 8.0, %v1713_v48 }
  0x6b   : > { %v1717_v51 = vpop.eup %1716  ;;  %v398_v52 = vmul.f32 8.0, %v1715_v49 }
  0x6c   : > { %v1719_v53 = vpop.eup %1718  ;;  %v411_v54 = vmul.f32 %v396_v50, %v1934_v24  ;;  %v400_v56 = vmul.f32 8.0, %v1717_v51 }
  0x6d   : > { %v412_v57 = vmul.f32 %v398_v52, %v1936_v25  ;;  %v402_v60 = vmul.f32 8.0, %v1719_v53  ;;  %v1721_v4 = vpop.eup %1720 }
  0x6e   : > { %v1510_v61 = vand.u32 2147483647, %v411_v54  ;;  %v1512_v62 = vcvt.f32.s32 %v411_v54  ;;  %v413_v63 = vmul.f32 %v400_v56, %v1938_v26  ;;  %v1515_v1 = vand.u32 2147483648, %v411_v54  ;;  %v1723_v8 = vpop.eup %1722 }
  0x6f   : > { %v1518_v2 = vand.u32 2147483647, %v412_v57  ;;  %v1520_v3 = vcvt.f32.s32 %v412_v57  ;;  %v414_v24 = vmul.f32 %v402_v60, %v1940_v27  ;;  %v1523_v6 = vand.u32 2147483648, %v412_v57  ;;  %v1725_v12 = vpop.eup %1724 }
  0x70   : > { %v1513_v5 = vcvt.s32.f32 %v1512_v62  ;;  %v1526_v25 = vand.u32 2147483647, %v413_v63  ;;  %v1528_v7 = vcvt.f32.s32 %v413_v63  ;;  %vm1996_vm2 = vcmp.lt.f32.partialorder %v1510_v61, 8388608.0  ;;  %v1727_v20 = vpop.eup %1726 }
  0x71   : > { %vm2000_vm3 = vcmp.lt.f32.partialorder %v1518_v2, 8388608.0  ;;  %v1521_v26 = vcvt.s32.f32 %v1520_v3  ;;  %v1534_v11 = vand.u32 2147483647, %v414_v24  ;;  %v1531_v27 = vand.u32 2147483648, %v413_v63 }
  0x72   : > { %v1514_v13 = vand.u32 2147483647, %v1513_v5  ;;  %v1529_v14 = vcvt.s32.f32 %v1528_v7  ;;  %v1536_v15 = vcvt.f32.s32 %v414_v24  ;;  %vm2004_vm4 = vcmp.lt.f32.partialorder %v1526_v25, 8388608.0 }
  0x73   : > { %v1522_v16 = vand.u32 2147483647, %v1521_v26  ;;  %v1539_v18 = vand.u32 2147483648, %v414_v24  ;;  %v404_v19 = vmul.f32 8.0, %v1721_v4  ;;  %v406_v31 = vmul.f32 8.0, %v1723_v8 }
  0x74   : > { %v1516_v21 = vor.u32 %v1515_v1, %v1514_v13  ;;  %v1530_v22 = vand.u32 2147483647, %v1529_v14  ;;  %v1537_v23 = vcvt.s32.f32 %v1536_v15  ;;  %vm2008_vm5 = vcmp.lt.f32.partialorder %v1534_v11, 8388608.0 }
  0x75   : > { %v1524_v32 = vor.u32 %v1523_v6, %v1522_v16  ;;  %v415_v34 = vmul.f32 %v404_v19, %v1942_v28  ;;  %v408_v35 = vmul.f32 8.0, %v1725_v12  ;;  %v416_v48 = vmul.f32 %v406_v31, %v1944_v29 }
  0x76   : > { %v1517_v36 = vsel %vm1996_vm2, %v1516_v21, %v411_v54  ;;  %v1532_v39 = vor.u32 %v1531_v27, %v1530_v22  ;;  %v1538_v42 = vand.u32 2147483647, %v1537_v23  ;;  %v410_v52 = vmul.f32 8.0, %v1727_v20 }
  0x77   : > { %v427_v49 = vmax.f32 %v1517_v36, -8.0  ;;  %v1525_v50 = vsel %vm2000_vm3, %v1524_v32, %v412_v57  ;;  %v1544_v51 = vcvt.f32.s32 %v415_v34  ;;  %v1542_v28 = vand.u32 2147483647, %v415_v34 }
  0x78   : > { %v428_v53 = vmax.f32 %v1525_v50, -8.0  ;;  %v1533_v56 = vsel %vm2004_vm4, %v1532_v39, %v413_v63  ;;  %v1540_v60 = vor.u32 %v1539_v18, %v1538_v42  ;;  %v1547_v54 = vand.u32 2147483648, %v415_v34 }
  0x79   : > { %v435_v61 = vmin.f32 %v427_v49, 7.0  ;;  %v429_v62 = vmax.f32 %v1533_v56, -8.0  ;;  %v1545_v1 = vcvt.s32.f32 %v1544_v51  ;;  %v1550_v3 = vand.u32 2147483647, %v416_v48 }
  0x7a   : > { %v436_v2 = vmin.f32 %v428_v53, 7.0  ;;  %v1541_v29 = vsel %vm2008_vm5, %v1540_v60, %v414_v24  ;;  %v1552_v4 = vcvt.f32.s32 %v416_v48  ;;  %vm2023_vm6 = vcmp.lt.f32.partialorder %v1542_v28, 8388608.0 }
  0x7b   : > { %v451_v5 = vmul.f32 %v443_v55, %v435_v61  ;;  %v437_v57 = vmin.f32 %v429_v62, 7.0  ;;  %v430_v6 = vmax.f32 %v1541_v29, -8.0  ;;  %v1546_v25 = vand.u32 2147483647, %v1545_v1 }
  0x7c   : > { %v452_v7 = vmul.f32 %v1988_v58, %v436_v2  ;;  %v1553_v8 = vcvt.s32.f32 %v1552_v4  ;;  %v1555_v9 = vand.u32 2147483648, %v416_v48  ;;  %v417_v11 = vmul.f32 %v408_v35, %v1946_v30 }
  0x7d   : > { %1468 = vmatprep.mubr.msk.f32.mxu0 %vm290_vm1, %v451_v5  ;;  %v453_v10 = vmul.f32 %v1990_v59, %v437_v57  ;;  %v438_v26 = vmin.f32 %v430_v6, 7.0  ;;  %v1548_v24 = vor.u32 %v1547_v54, %v1546_v25  ;;  %v418_v12 = vmul.f32 %v410_v52, %v1954_v37 }
  0x7e   : > { %1469 = vmatmul.mubr.msk.f32.vlgmr.msra.gmra.mxu0 %vm290_vm1, %v452_v7  ;;  %v1554_v55 = vand.u32 2147483647, %v1553_v8  ;;  %vm1551_vm7 = vcmp.lt.f32.partialorder %v1550_v3, 8388608.0  ;;  %v1560_v14 = vcvt.f32.s32 %v417_v11  ;;  %v447_v59 = vmul.f32 0.125, %v391_v43 }
  0x7f   : > { %1471 = vmatprep.mubr.msk.f32.mxu0 %vm290_vm1, %v453_v10  ;;  %v454_v58 = vmul.f32 %v1993_v0, %v438_v26  ;;  %v1549_v13 = vsel %vm2023_vm6, %v1548_v24, %v415_v34  ;;  %v1558_v30 = vand.u32 2147483647, %v417_v11  ;;  %v1563_v17 = vand.u32 2147483648, %v417_v11 }
  0x80   : > { %v431_v27 = vmax.f32 %v1549_v13, -8.0  ;;  %v1556_v15 = vor.u32 %v1555_v9, %v1554_v55  ;;  %v1561_v16 = vcvt.s32.f32 %v1560_v14  ;;  %v1568_v18 = vcvt.f32.s32 %v418_v12 }
  0x81   : > { %v448_v0 = vmul.f32 0.125, %v392_v44  ;;  %v1566_v20 = vand.u32 2147483647, %v418_v12  ;;  %v1571_v31 = vand.u32 2147483648, %v418_v12  ;;  %vm1559_vm8 = vcmp.lt.f32.partialorder %v1558_v30, 8388608.0 }
  0x82   : > { %1472 = vmatmul.mubr.msk.f32.gmra.mxu0 %vm290_vm1, %v454_v58  ;;  %v439_v37 = vmin.f32 %v431_v27, 7.0  ;;  %v1557_v19 = vsel %vm1551_vm7, %v1556_v15, %v416_v48  ;;  %v1562_v22 = vand.u32 2147483647, %v1561_v16  ;;  %v1569_v23 = vcvt.s32.f32 %v1568_v18 }
  0x83   : > { %v432_v21 = vmax.f32 %v1557_v19, -8.0  ;;  %vm1567_vm9 = vcmp.lt.f32.partialorder %v1566_v20, 8388608.0  ;;  %v450_v49 = vmul.f32 0.125, %v394_v47 }
  0x84   : > { %v455_v32 = vmul.f32 %v447_v59, %v439_v37  ;;  %v1564_v43 = vor.u32 %v1563_v17, %v1562_v22  ;;  %v1570_v33 = vand.u32 2147483647, %v1569_v23 }
  0x85   : > { %v440_v38 = vmin.f32 %v432_v21, 7.0 }
  0x86   : > { %1474 = vmatprep.mubr.msk.f32.mxu1 %vm290_vm1, %v455_v32  ;;  %v1565_v35 = vsel %vm1559_vm8, %v1564_v43, %v417_v11  ;;  %v1572_v36 = vor.u32 %v1571_v31, %v1570_v33 }
  0x87   : > { %v456_v34 = vmul.f32 %v448_v0, %v440_v38  ;;  %v433_v39 = vmax.f32 %v1565_v35, -8.0 }
  0x88   : > { %v1573_v44 = vsel %vm1567_vm9, %v1572_v36, %v418_v12 }
  0x89   : > { %1475 = vmatmul.mubr.msk.f32.vlgmr.msra.gmra.mxu1 %vm290_vm1, %v456_v34  ;;  %v441_v42 = vmin.f32 %v433_v39, 7.0  ;;  %v434_v48 = vmax.f32 %v1573_v44, -8.0 }
  0x8a   : > { %1481 = vmatpush3.msra.mxu1 %v777_v41 }
  0x8b   : > { %v457_v50 = vmul.f32 %v449_v40, %v441_v42  ;;  %v442_v51 = vmin.f32 %v434_v48, 7.0 }
  0x8d   : > { %1477 = vmatprep.mubr.msk.f32.mxu1 %vm290_vm1, %v457_v50  ;;  %v458_v52 = vmul.f32 %v450_v49, %v442_v51 }
  0x8f   : > { %1478 = vmatmul.mubr.msk.f32.gmra.mxu1 %vm290_vm1, %v458_v52 }
 0x13e   : > { %v1470_v46 = vpop.f32.mrf.mxu0 }
 0x13f   : > { %v594_v53 = vmax.f32 %v1470_v46, 0.0 }
 0x140   : > { %v554_v56 = vpop.f32.mrf.mxu0 }
 0x141   : > { %v593_v60 = vmax.f32 %v554_v56, 0.0  ;;  %v602_v45 = vmul.f32 %v594_v53, %v594_v53 }
 0x142   : > { %v1473_v28 = vpop.f32.mrf.mxu0 }
 0x143   : > { %v601_v47 = vmul.f32 %v593_v60, %v593_v60  ;;  %v596_v61 = vmax.f32 %v1473_v28, 0.0  ;;  %v611_v2 = vsel %vm609_vm10, %v602_v45, 0.0 }
 0x144   : > { %v564_v62 = vpop.f32.mrf.mxu0 }
 0x145   : > { %v610_v1 = vsel %vm609_vm10, %v601_v47, 0.0  ;;  %v595_v54 = vmax.f32 %v564_v62, 0.0  ;;  %v604_v4 = vmul.f32 %v596_v61, %v596_v61 }
 0x146   : > { %v612_v3 = vadd.f32 %v611_v2, %v610_v1 }
 0x147   : > { %v603_v29 = vmul.f32 %v595_v54, %v595_v54  ;;  %v615_v63 = vsel %vm609_vm10, %v604_v4, 0.0 }
 0x149   : > { %v613_v5 = vsel %vm609_vm10, %v603_v29, 0.0  ;;  %v1476_v57 = vpop.f32.mrf.mxu1 }
 0x14a   : > { %v614_v6 = vadd.f32 %v613_v5, %v612_v3  ;;  %v598_v25 = vmax.f32 %v1476_v57, 0.0 }
 0x14b   : > { %v574_v7 = vpop.f32.mrf.mxu1 }
 0x14c   : > { %v597_v8 = vmax.f32 %v574_v7, 0.0  ;;  %v616_v9 = vadd.f32 %v615_v63, %v614_v6  ;;  %v606_v26 = vmul.f32 %v598_v25, %v598_v25 }
 0x14e   : > { %v605_v10 = vmul.f32 %v597_v8, %v597_v8  ;;  %v619_v13 = vsel %vm609_vm10, %v606_v26, 0.0 }
 0x14f   : > { %v1479_v11 = vpop.f32.mrf.mxu1 }
 0x150   : > { %v617_v24 = vsel %vm609_vm10, %v605_v10, 0.0  ;;  %v600_v12 = vmax.f32 %v1479_v11, 0.0 }
 0x151   : > { %v618_v55 = vadd.f32 %v617_v24, %v616_v9  ;;  %v584_v58 = vpop.f32.mrf.mxu1 }
 0x152   : > { %v599_v14 = vmax.f32 %v584_v58, 0.0  ;;  %v608_v59 = vmul.f32 %v600_v12, %v600_v12 }
 0x153   : > { %v620_v27 = vadd.f32 %v619_v13, %v618_v55 }
 0x154   : > { %v607_v15 = vmul.f32 %v599_v14, %v599_v14  ;;  %v623_v17 = vsel %vm609_vm10, %v608_v59, 0.0 }
 0x156   : > { %v621_v30 = vsel %vm609_vm10, %v607_v15, 0.0 }
 0x157   : > { %v622_v16 = vadd.f32 %v621_v30, %v620_v27 }
 0x159   : > { %v624_v18 = vadd.f32 %v623_v17, %v622_v16 }
 0x15b   : > { %v625_v37 = vrot.slane %v624_v18, 4 }
 0x15d   : > { %v626_v19 = vadd.f32 %v625_v37, %v624_v18 }
 0x15f   : > { %v627_v0 = vrot.slane %v626_v19, 2 }
 0x161   : > { %v628_v20 = vadd.f32 %v627_v0, %v626_v19 }
 0x163   : > { %v629_v21 = vrot.slane %v628_v20, 1 }
 0x165   : > { %v630_v22 = vadd.f32 %v629_v21, %v628_v20 }
 0x167   : > { %v631_v23 = vmul.f32 0.015625, %v630_v22 }
 0x169   : > { %1728 = vrsqrt.f32 %v631_v23 }
 0x176   : > { %v1729_v31 = vpop.eup %1728 }
 0x177   : > { %v2060_v32 = vmul.f32 %v1729_v31, %v599_v14  ;;  %v2062_v38 = vmul.f32 %v1729_v31, %v593_v60  ;;  %v2064_v43 = vmul.f32 %v1729_v31, %v594_v53  ;;  %v2066_v33 = vmul.f32 %v1729_v31, %v595_v54 }
 0x178   : > { %v2068_v34 = vmul.f32 %v1729_v31, %v596_v61  ;;  %v2070_v35 = vmul.f32 %v1729_v31, %v597_v8  ;;  %v2072_v36 = vmul.f32 %v1729_v31, %v598_v25  ;;  %v2080_v50 = vmul.f32 %v1729_v31, %v600_v12 }
 0x179   : > { %v647_v39 = vand.u32 2147483647, %v2060_v32  ;;  %v641_v40 = vand.u32 2147483647, %v2062_v38  ;;  %v642_v44 = vand.u32 2147483647, %v2064_v43 }
 0x17a   : > { %v643_v42 = vand.u32 2147483647, %v2066_v33  ;;  %v644_v48 = vand.u32 2147483647, %v2068_v34  ;;  %v645_v49 = vand.u32 2147483647, %v2070_v35 }
 0x17b   : > { %v691_v51 = vsel %vm609_vm10, %v647_v39, -inf  ;;  %v649_v52 = vsel %vm609_vm10, %v641_v40, -inf  ;;  %v656_v41 = vsel %vm609_vm10, %v642_v44, -inf  ;;  %v646_v46 = vand.u32 2147483647, %v2072_v36 }
 0x17c   : > { %v692_v53 = vrot.slane %v691_v51, 4  ;;  %v650_v56 = vrot.slane %v649_v52, 4  ;;  %v657_v60 = vrot.slane %v656_v41, 4  ;;  %v663_v28 = vsel %vm609_vm10, %v643_v42, -inf }
 0x17d   : > { %v664_v45 = vrot.slane %v663_v28, 4  ;;  %v670_v47 = vsel %vm609_vm10, %v644_v48, -inf  ;;  %v677_v61 = vsel %vm609_vm10, %v645_v49, -inf  ;;  %v684_v62 = vsel %vm609_vm10, %v646_v46, -inf }
 0x17e   : > { %v693_v1 = vmax.f32 %v691_v51, %v692_v53  ;;  %v651_v54 = vmax.f32 %v649_v52, %v650_v56  ;;  %v658_v2 = vmax.f32 %v656_v41, %v657_v60  ;;  %v671_v29 = vrot.slane %v670_v47, 4 }
 0x17f   : > { %v665_v3 = vmax.f32 %v663_v28, %v664_v45  ;;  %v678_v4 = vrot.slane %v677_v61, 4  ;;  %v685_v5 = vrot.slane %v684_v62, 4  ;;  %v648_v57 = vand.u32 2147483647, %v2080_v50 }
 0x180   : > { %v694_v6 = vrot.slane %v693_v1, 2  ;;  %v652_v25 = vrot.slane %v651_v54, 2  ;;  %v659_v7 = vrot.slane %v658_v2, 2  ;;  %v672_v63 = vmax.f32 %v670_v47, %v671_v29 }
 0x181   : > { %v666_v8 = vrot.slane %v665_v3, 2  ;;  %v679_v9 = vmax.f32 %v677_v61, %v678_v4  ;;  %v686_v10 = vmax.f32 %v684_v62, %v685_v5  ;;  %v698_v26 = vsel %vm609_vm10, %v648_v57, -inf }
 0x182   : > { %v695_v24 = vmax.f32 %v693_v1, %v694_v6  ;;  %v653_v11 = vmax.f32 %v651_v54, %v652_v25  ;;  %v660_v55 = vmax.f32 %v658_v2, %v659_v7  ;;  %v673_v12 = vrot.slane %v672_v63, 2 }
 0x183   : > { %v667_v58 = vmax.f32 %v665_v3, %v666_v8  ;;  %v680_v13 = vrot.slane %v679_v9, 2  ;;  %v687_v14 = vrot.slane %v686_v10, 2  ;;  %v699_v27 = vrot.slane %v698_v26, 4 }
 0x184   : > { %v696_v59 = vrot.slane %v695_v24, 1  ;;  %v654_v15 = vrot.slane %v653_v11, 1  ;;  %v661_v30 = vrot.slane %v660_v55, 1  ;;  %v674_v16 = vmax.f32 %v672_v63, %v673_v12 }
 0x185   : > { %v668_v17 = vrot.slane %v667_v58, 1  ;;  %v681_v18 = vmax.f32 %v679_v9, %v680_v13  ;;  %v688_v37 = vmax.f32 %v686_v10, %v687_v14  ;;  %v700_v19 = vmax.f32 %v698_v26, %v699_v27 }
 0x186   : > { %v2092_v0 = vmax.f32 %v695_v24, %v696_v59  ;;  %v655_v20 = vmax.f32 %v653_v11, %v654_v15  ;;  %v662_v21 = vmax.f32 %v660_v55, %v661_v30  ;;  %v675_v22 = vrot.slane %v674_v16, 1 }
 0x187   : > { %v669_v23 = vmax.f32 %v667_v58, %v668_v17  ;;  %v682_v31 = vrot.slane %v681_v18, 1  ;;  %v689_v39 = vrot.slane %v688_v37, 1  ;;  %v701_v52 = vrot.slane %v700_v19, 2 }
 0x188   : > { %v711_v40 = vmax.f32 %v2092_v0, 1e-05  ;;  %v705_v44 = vmax.f32 %v655_v20, 1e-05  ;;  %v706_v42 = vmax.f32 %v662_v21, 1e-05  ;;  %v2095_v48 = vmax.f32 %v674_v16, %v675_v22 }
 0x189   : > { %v707_v49 = vmax.f32 %v669_v23, 1e-05  ;;  %v2097_v51 = vmax.f32 %v681_v18, %v682_v31  ;;  %v2101_v41 = vmax.f32 %v688_v37, %v689_v39  ;;  %v702_v56 = vmax.f32 %v700_v19, %v701_v52  ;;  %v1090_v0 = vld [vmem:[%s2394_s3] sm:$0xf] }
 0x18a   : > { %1730 = vrcp.f32 %v711_v40  ;;  %v708_v46 = vmax.f32 %v2095_v48, 1e-05  ;;  %v761_v8 = vmul.f32 0.125, %v705_v44  ;;  %v762_v24 = vmul.f32 0.125, %v706_v42  ;;  %1494 = vmatprep.subr.msk.mxu0 %vm484_vm0, %v1090_v0 }
 0x18b   : > { %1732 = vrcp.f32 %v705_v44  ;;  %v709_v53 = vmax.f32 %v2097_v51, 1e-05  ;;  %v710_v60 = vmax.f32 %v2101_v41, 1e-05  ;;  %v703_v28 = vrot.slane %v702_v56, 1  ;;  %1495 = vmatpush3.msk.msra.mxu0 %vm484_vm0, %v1090_v0 }
 0x18c   : > { %1734 = vrcp.f32 %v706_v42  ;;  %v763_v11 = vmul.f32 0.125, %v707_v49 }
 0x18d   : > { %1736 = vrcp.f32 %v707_v49  ;;  %v2112_v45 = vmax.f32 %v702_v56, %v703_v28 }
 0x18e   : > { %1738 = vrcp.f32 %v708_v46 }
 0x18f   : > { %1740 = vrcp.f32 %v709_v53  ;;  %v712_v2 = vmax.f32 %v2112_v45, 1e-05 }
 0x190   : > { %1742 = vrcp.f32 %v710_v60 }
 0x191   : > { %1744 = vrcp.f32 %v712_v2 }
 0x197   : > { %v1731_v47 = vpop.eup %1730 }
 0x198   : > { %v1733_v61 = vpop.eup %1732  ;;  %v726_v62 = vmul.f32 8.0, %v1731_v47 }
 0x199   : > { %v1735_v1 = vpop.eup %1734  ;;  %v714_v54 = vmul.f32 8.0, %v1733_v61 }
 0x19a   : > { %v1737_v29 = vpop.eup %1736  ;;  %v2116_v3 = vmul.f32 %v726_v62, %v2060_v32  ;;  %v716_v4 = vmul.f32 8.0, %v1735_v1 }
 0x19b   : > { %v729_v5 = vmul.f32 %v714_v54, %v2062_v38  ;;  %v718_v57 = vmul.f32 8.0, %v1737_v29  ;;  %v1739_v7 = vpop.eup %1738 }
 0x19c   : > { %v1624_v6 = vcvt.f32.s32 %v2116_v3  ;;  %v730_v25 = vmul.f32 %v716_v4, %v2064_v43  ;;  %v1741_v10 = vpop.eup %1740  ;;  %v1622_v32 = vand.u32 2147483647, %v2116_v3  ;;  %v1627_v55 = vand.u32 2147483648, %v2116_v3 }
 0x19d   : > { %v1576_v63 = vcvt.f32.s32 %v729_v5  ;;  %v731_v9 = vmul.f32 %v718_v57, %v2066_v33  ;;  %v1743_v38 = vpop.eup %1742  ;;  %v1574_v12 = vand.u32 2147483647, %v729_v5  ;;  %v1579_v14 = vand.u32 2147483648, %v729_v5 }
 0x19e   : > { %v1584_v26 = vcvt.f32.s32 %v730_v25  ;;  %v1625_v13 = vcvt.s32.f32 %v1624_v6  ;;  %v1582_v27 = vand.u32 2147483647, %v730_v25  ;;  %v1587_v15 = vand.u32 2147483648, %v730_v25 }
 0x19f   : > { %v1577_v58 = vcvt.s32.f32 %v1576_v63  ;;  %v1592_v43 = vcvt.f32.s32 %v731_v9  ;;  %v720_v16 = vmul.f32 8.0, %v1739_v7  ;;  %v1590_v18 = vand.u32 2147483647, %v731_v9  ;;  %v1745_v63 = vpop.eup %1744 }
 0x1a0   : > { %v1585_v59 = vcvt.s32.f32 %v1584_v26  ;;  %v722_v37 = vmul.f32 8.0, %v1741_v10  ;;  %v724_v19 = vmul.f32 8.0, %v1743_v38  ;;  %v1595_v22 = vand.u32 2147483648, %v731_v9 }
 0x1a1   : > { %v1578_v33 = vand.u32 2147483647, %v1577_v58  ;;  %v1593_v30 = vcvt.s32.f32 %v1592_v43  ;;  %v732_v23 = vmul.f32 %v720_v16, %v2068_v34  ;;  %v1626_v31 = vand.u32 2147483647, %v1625_v13 }
 0x1a2   : > { %v1586_v17 = vand.u32 2147483647, %v1585_v59  ;;  %vm1575_vm11 = vcmp.lt.f32.partialorder %v1574_v12, 8388608.0  ;;  %v733_v44 = vmul.f32 %v722_v37, %v2070_v35  ;;  %vm1583_vm12 = vcmp.lt.f32.partialorder %v1582_v27, 8388608.0 }
 0x1a3   : > { %v1580_v20 = vor.u32 %v1579_v14, %v1578_v33  ;;  %v1594_v21 = vand.u32 2147483647, %v1593_v30  ;;  %v1600_v52 = vcvt.f32.s32 %v732_v23  ;;  %vm1591_vm13 = vcmp.lt.f32.partialorder %v1590_v18, 8388608.0 }
 0x1a4   : > { %v1588_v39 = vor.u32 %v1587_v15, %v1586_v17  ;;  %v734_v47 = vmul.f32 %v724_v19, %v2072_v36  ;;  %v1598_v1 = vand.u32 2147483647, %v732_v23  ;;  %v1628_v29 = vor.u32 %v1627_v55, %v1626_v31 }
 0x1a5   : > { %v1581_v42 = vsel %vm1575_vm11, %v1580_v20, %v729_v5  ;;  %v1596_v49 = vor.u32 %v1595_v22, %v1594_v21  ;;  %v1601_v54 = vcvt.s32.f32 %v1600_v52  ;;  %v1608_v57 = vcvt.f32.s32 %v733_v44 }
 0x1a6   : > { %v745_v56 = vmax.f32 %v1581_v42, -8.0  ;;  %v1589_v28 = vsel %vm1583_vm12, %v1588_v39, %v730_v25  ;;  %v1603_v35 = vand.u32 2147483648, %v732_v23  ;;  %vm2129_vm14 = vcmp.lt.f32.partialorder %v1622_v32, 8388608.0 }
 0x1a7   : > { %v746_v61 = vmax.f32 %v1589_v28, -8.0  ;;  %v1597_v62 = vsel %vm1591_vm13, %v1596_v49, %v731_v9  ;;  %v1602_v7 = vand.u32 2147483647, %v1601_v54  ;;  %v1609_v26 = vcvt.s32.f32 %v1608_v57 }
 0x1a8   : > { %v753_v34 = vmin.f32 %v745_v56, 7.0  ;;  %v747_v4 = vmax.f32 %v1597_v62, -8.0  ;;  %v1616_v36 = vcvt.f32.s32 %v734_v47  ;;  %vm1599_vm15 = vcmp.lt.f32.partialorder %v1598_v1, 8388608.0 }
 0x1a9   : > { %v754_v6 = vmin.f32 %v746_v61, 7.0  ;;  %v1604_v9 = vor.u32 %v1603_v35, %v1602_v7  ;;  %v1606_v12 = vand.u32 2147483647, %v733_v44  ;;  %v1610_v58 = vand.u32 2147483647, %v1609_v26 }
 0x1aa   : > { %v769_v25 = vmul.f32 %v761_v8, %v753_v34  ;;  %v755_v10 = vmin.f32 %v747_v4, 7.0  ;;  %v1611_v43 = vand.u32 2147483648, %v733_v44  ;;  %v1617_v13 = vcvt.s32.f32 %v1616_v36 }
 0x1ab   : > { %v770_v38 = vmul.f32 %v762_v24, %v754_v6  ;;  %v1605_v32 = vsel %vm1599_vm15, %v1604_v9, %v732_v23  ;;  %v1614_v14 = vand.u32 2147483647, %v734_v47  ;;  %v1629_v8 = vsel %vm2129_vm14, %v1628_v29, %v2116_v3 }
 0x1ac   : > { %1482 = vmatprep.mubr.msk.f32.mxu1 %vm609_vm10, %v769_v25  ;;  %v771_v55 = vmul.f32 %v763_v11, %v755_v10  ;;  %v728_v27 = vmul.f32 8.0, %v1745_v63  ;;  %v748_v24 = vmax.f32 %v1605_v32, -8.0  ;;  %v1612_v59 = vor.u32 %v1611_v43, %v1610_v58 }
 0x1ad   : > { %1483 = vmatmul.mubr.msk.f32.vlgmr.msra.gmra.mxu1 %vm609_vm10, %v770_v38  ;;  %v1618_v33 = vand.u32 2147483647, %v1617_v13  ;;  %v1619_v15 = vand.u32 2147483648, %v734_v47  ;;  %v764_v11 = vmul.f32 0.125, %v708_v46  ;;  %vm1607_vm2 = vcmp.lt.f32.partialorder %v1606_v12, 8388608.0 }
 0x1ae   : > { %1485 = vmatprep.mubr.msk.f32.mxu1 %vm609_vm10, %v771_v55  ;;  %v736_v30 = vmul.f32 %v728_v27, %v2080_v50  ;;  %v756_v16 = vmin.f32 %v748_v24, 7.0  ;;  %v1613_v17 = vsel %vm1607_vm2, %v1612_v59, %v733_v44  ;;  %v751_v37 = vmax.f32 %v1629_v8, -8.0 }
 0x1af   : > { %v1620_v18 = vor.u32 %v1619_v15, %v1618_v33  ;;  %v749_v19 = vmax.f32 %v1613_v17, -8.0  ;;  %vm1615_vm3 = vcmp.lt.f32.partialorder %v1614_v14, 8388608.0  ;;  %v765_v23 = vmul.f32 0.125, %v709_v53 }
 0x1b0   : > { %v1632_v3 = vcvt.f32.s32 %v736_v30  ;;  %v772_v20 = vmul.f32 %v764_v11, %v756_v16  ;;  %v766_v50 = vmul.f32 0.125, %v710_v60  ;;  %v759_v48 = vmin.f32 %v751_v37, 7.0 }
 0x1b1   : > { %v1621_v21 = vsel %vm1615_vm3, %v1620_v18, %v734_v47  ;;  %v757_v22 = vmin.f32 %v749_v19, 7.0  ;;  %v1630_v46 = vand.u32 2147483647, %v736_v30  ;;  %v1635_v52 = vand.u32 2147483648, %v736_v30 }
 0x1b2   : > { %v750_v31 = vmax.f32 %v1621_v21, -8.0  ;;  %v1633_v39 = vcvt.s32.f32 %v1632_v3  ;;  %1486 = vmatmul.mubr.msk.f32.gmra.mxu1 %vm609_vm10, %v772_v20  ;;  %v767_v56 = vmul.f32 0.125, %v711_v40  ;;  %v768_v61 = vmul.f32 0.125, %v712_v2 }
 0x1b3   : > { %v773_v44 = vmul.f32 %v765_v23, %v757_v22  ;;  %vm1631_vm4 = vcmp.lt.f32.partialorder %v1630_v46, 8388608.0 }
 0x1b4   : > { %v758_v42 = vmin.f32 %v750_v31, 7.0  ;;  %v1634_v49 = vand.u32 2147483647, %v1633_v39  ;;  %v775_v28 = vmul.f32 %v767_v56, %v759_v48 }
 0x1b5   : > { %1488 = vmatprep.mubr.msk.f32.mxu1 %vm609_vm10, %v773_v44 }
 0x1b6   : > { %v774_v51 = vmul.f32 %v766_v50, %v758_v42  ;;  %v1636_v53 = vor.u32 %v1635_v52, %v1634_v49 }
 0x1b8   : > { %1489 = vmatmul.mubr.msk.f32.gmra.mxu1 %vm609_vm10, %v774_v51  ;;  %v1637_v47 = vsel %vm1631_vm4, %v1636_v53, %v736_v30 }
 0x1b9   : > { %1491 = vmatprep.mubr.msk.f32.mxu1 %vm609_vm10, %v775_v28  ;;  %v752_v41 = vmax.f32 %v1637_v47, -8.0 }
 0x1bb   : > { %v760_v60 = vmin.f32 %v752_v41, 7.0 }
 0x1bd   : > { %v776_v62 = vmul.f32 %v768_v61, %v760_v60 }
 0x1bf   : > { %1492 = vmatmul.mubr.msk.f32.gmra.mxu1 %vm609_vm10, %v776_v62 }
 0x26d   : > { %v1484_v40 = vpop.f32.mrf.mxu1 }
 0x26e   : > { %v908_v29 = vmax.f32 %v1484_v40, 0.0 }
 0x26f   : > { %v868_v1 = vpop.f32.mrf.mxu1 }
 0x270   : > { %v907_v54 = vmax.f32 %v868_v1, 0.0  ;;  %v916_v57 = vmul.f32 %v908_v29, %v908_v29 }
 0x272   : > { %v915_v34 = vmul.f32 %v907_v54, %v907_v54  ;;  %v1487_v4 = vpop.f32.mrf.mxu1  ;;  %v924_v35 = vsel %vm290_vm1, %v916_v57, 0.0 }
 0x273   : > { %v910_v45 = vmax.f32 %v1487_v4, 0.0 }
 0x274   : > { %v878_v2 = vpop.f32.mrf.mxu1  ;;  %v923_v6 = vsel %vm290_vm1, %v915_v34, 0.0 }
 0x275   : > { %v909_v7 = vmax.f32 %v878_v2, 0.0  ;;  %v918_v5 = vmul.f32 %v910_v45, %v910_v45  ;;  %v925_v10 = vadd.f32 %v924_v35, %v923_v6 }
 0x277   : > { %v917_v63 = vmul.f32 %v909_v7, %v909_v7  ;;  %v928_v55 = vsel %vm290_vm1, %v918_v5, 0.0 }
 0x278   : > { %v1490_v25 = vpop.f32.mrf.mxu1 }
 0x279   : > { %v926_v26 = vsel %vm290_vm1, %v917_v63, 0.0  ;;  %v912_v36 = vmax.f32 %v1490_v25, 0.0 }
 0x27a   : > { %v888_v38 = vpop.f32.mrf.mxu1  ;;  %v927_v9 = vadd.f32 %v926_v26, %v925_v10 }
 0x27b   : > { %v911_v12 = vmax.f32 %v888_v38, 0.0  ;;  %v920_v13 = vmul.f32 %v912_v36, %v912_v36 }
 0x27c   : > { %v929_v43 = vadd.f32 %v928_v55, %v927_v9 }
 0x27d   : > { %v919_v58 = vmul.f32 %v911_v12, %v911_v12  ;;  %v932_v59 = vsel %vm290_vm1, %v920_v13, 0.0 }
 0x27f   : > { %v930_v32 = vsel %vm290_vm1, %v919_v58, 0.0  ;;  %v1493_v14 = vpop.f32.mrf.mxu1 }
 0x280   : > { %v931_v8 = vadd.f32 %v930_v32, %v929_v43  ;;  %v914_v27 = vmax.f32 %v1493_v14, 0.0 }
 0x281   : > { %v898_v24 = vpop.f32.mrf.mxu1 }
 0x282   : > { %v913_v33 = vmax.f32 %v898_v24, 0.0  ;;  %v933_v15 = vadd.f32 %v932_v59, %v931_v8  ;;  %v922_v11 = vmul.f32 %v914_v27, %v914_v27 }
 0x284   : > { %v921_v30 = vmul.f32 %v913_v33, %v913_v33  ;;  %v936_v18 = vsel %vm290_vm1, %v922_v11, 0.0 }
 0x286   : > { %v934_v16 = vsel %vm290_vm1, %v921_v30, 0.0 }
 0x287   : > { %v935_v17 = vadd.f32 %v934_v16, %v933_v15 }
 0x289   : > { %v937_v37 = vadd.f32 %v936_v18, %v935_v17 }
 0x28b   : > { %v938_v19 = vrot.slane %v937_v37, 4 }
 0x28d   : > { %v939_v3 = vadd.f32 %v938_v19, %v937_v37 }
 0x28f   : > { %v940_v20 = vrot.slane %v939_v3, 2 }
 0x291   : > { %v941_v21 = vadd.f32 %v940_v20, %v939_v3 }
 0x293   : > { %v942_v22 = vrot.slane %v941_v21, 1 }
 0x295   : > { %v943_v23 = vadd.f32 %v942_v22, %v941_v21 }
 0x297   : > { %v944_v31 = vmul.f32 0.015625, %v943_v23 }
 0x299   : > { %1746 = vrsqrt.f32 %v944_v31 }
 0x2a6   : > { %v1747_v39 = vpop.eup %1746 }
 0x2a7   : > { %v2168_v50 = vmul.f32 %v1747_v39, %v913_v33  ;;  %v2170_v48 = vmul.f32 %v1747_v39, %v907_v54  ;;  %v2172_v46 = vmul.f32 %v1747_v39, %v908_v29  ;;  %v2174_v44 = vmul.f32 %v1747_v39, %v909_v7 }
 0x2a8   : > { %v2176_v42 = vmul.f32 %v1747_v39, %v910_v45  ;;  %v2178_v49 = vmul.f32 %v1747_v39, %v911_v12  ;;  %v2180_v52 = vmul.f32 %v1747_v39, %v912_v36  ;;  %v2188_v60 = vmul.f32 %v1747_v39, %v914_v27 }
 0x2a9   : > { %v960_v56 = vand.u32 2147483647, %v2168_v50  ;;  %v954_v51 = vand.u32 2147483647, %v2170_v48  ;;  %v955_v53 = vand.u32 2147483647, %v2172_v46 }
 0x2aa   : > { %v956_v28 = vand.u32 2147483647, %v2174_v44  ;;  %v957_v47 = vand.u32 2147483647, %v2176_v42  ;;  %v958_v41 = vand.u32 2147483647, %v2178_v49 }
 0x2ab   : > { %v1004_v61 = vsel %vm290_vm1, %v960_v56, -inf  ;;  %v962_v62 = vsel %vm290_vm1, %v954_v51, -inf  ;;  %v969_v0 = vsel %vm290_vm1, %v955_v53, -inf  ;;  %v959_v40 = vand.u32 2147483647, %v2180_v52 }
 0x2ac   : > { %v1005_v1 = vrot.slane %v1004_v61, 4  ;;  %v963_v54 = vrot.slane %v962_v62, 4  ;;  %v970_v29 = vrot.slane %v969_v0, 4  ;;  %v976_v34 = vsel %vm290_vm1, %v956_v28, -inf }
 0x2ad   : > { %v977_v4 = vrot.slane %v976_v34, 4  ;;  %v983_v57 = vsel %vm290_vm1, %v957_v47, -inf  ;;  %v990_v45 = vsel %vm290_vm1, %v958_v41, -inf  ;;  %v997_v2 = vsel %vm290_vm1, %v959_v40, -inf }
 0x2ae   : > { %v1006_v6 = vmax.f32 %v1004_v61, %v1005_v1  ;;  %v964_v7 = vmax.f32 %v962_v62, %v963_v54  ;;  %v971_v35 = vmax.f32 %v969_v0, %v970_v29  ;;  %v984_v5 = vrot.slane %v983_v57, 4 }
 0x2af   : > { %v978_v63 = vmax.f32 %v976_v34, %v977_v4  ;;  %v991_v25 = vrot.slane %v990_v45, 4  ;;  %v998_v10 = vrot.slane %v997_v2, 4  ;;  %v961_v26 = vand.u32 2147483647, %v2188_v60 }
 0x2b0   : > { %v1007_v36 = vrot.slane %v1006_v6, 2  ;;  %v965_v38 = vrot.slane %v964_v7, 2  ;;  %v972_v9 = vrot.slane %v971_v35, 2  ;;  %v985_v12 = vmax.f32 %v983_v57, %v984_v5 }
 0x2b1   : > { %v979_v55 = vrot.slane %v978_v63, 2  ;;  %v992_v58 = vmax.f32 %v990_v45, %v991_v25  ;;  %v999_v43 = vmax.f32 %v997_v2, %v998_v10  ;;  %v1011_v13 = vsel %vm290_vm1, %v961_v26, -inf }
 0x2b2   : > { %v1008_v32 = vmax.f32 %v1006_v6, %v1007_v36  ;;  %v966_v14 = vmax.f32 %v964_v7, %v965_v38  ;;  %v973_v8 = vmax.f32 %v971_v35, %v972_v9  ;;  %v986_v27 = vrot.slane %v985_v12, 2 }
 0x2b3   : > { %v980_v24 = vmax.f32 %v978_v63, %v979_v55  ;;  %v993_v59 = vrot.slane %v992_v58, 2  ;;  %v1000_v33 = vrot.slane %v999_v43, 2  ;;  %v1012_v15 = vrot.slane %v1011_v13, 4 }
 0x2b4   : > { %v1009_v11 = vrot.slane %v1008_v32, 1  ;;  %v967_v30 = vrot.slane %v966_v14, 1  ;;  %v974_v16 = vrot.slane %v973_v8, 1  ;;  %v987_v17 = vmax.f32 %v985_v12, %v986_v27 }
 0x2b5   : > { %v981_v18 = vrot.slane %v980_v24, 1  ;;  %v994_v37 = vmax.f32 %v992_v58, %v993_v59  ;;  %v1001_v19 = vmax.f32 %v999_v43, %v1000_v33  ;;  %v1013_v3 = vmax.f32 %v1011_v13, %v1012_v15 }
 0x2b6   : > { %v2200_v20 = vmax.f32 %v1008_v32, %v1009_v11  ;;  %v968_v21 = vmax.f32 %v966_v14, %v967_v30  ;;  %v975_v22 = vmax.f32 %v973_v8, %v974_v16  ;;  %v988_v23 = vrot.slane %v987_v17, 1 }
 0x2b7   : > { %v982_v31 = vmax.f32 %v980_v24, %v981_v18  ;;  %v995_v39 = vrot.slane %v994_v37, 1  ;;  %v1014_v56 = vrot.slane %v1013_v3, 2  ;;  %v1002_v61 = vrot.slane %v1001_v19, 1 }
 0x2b8   : > { %v1024_v51 = vmax.f32 %v2200_v20, 1e-05  ;;  %v1018_v53 = vmax.f32 %v968_v21, 1e-05  ;;  %v1019_v28 = vmax.f32 %v975_v22, 1e-05  ;;  %v2203_v41 = vmax.f32 %v987_v17, %v988_v23 }
 0x2b9   : > { %v1020_v47 = vmax.f32 %v982_v31, 1e-05  ;;  %v1015_v62 = vmax.f32 %v1013_v3, %v1014_v56  ;;  %v2207_v0 = vmax.f32 %v994_v37, %v995_v39  ;;  %v2210_v54 = vmax.f32 %v1001_v19, %v1002_v61 }
 0x2ba   : > { %1748 = vrcp.f32 %v1024_v51  ;;  %v1021_v1 = vmax.f32 %v2203_v41, 1e-05  ;;  %v1074_v55 = vmul.f32 0.125, %v1018_v53  ;;  %v1075_v14 = vmul.f32 0.125, %v1019_v28 }
 0x2bb   : > { %1750 = vrcp.f32 %v1018_v53  ;;  %v1016_v40 = vrot.slane %v1015_v62, 1  ;;  %v1022_v29 = vmax.f32 %v2207_v0, 1e-05  ;;  %v1023_v4 = vmax.f32 %v2210_v54, 1e-05 }
 0x2bc   : > { %1752 = vrcp.f32 %v1019_v28  ;;  %v1076_v8 = vmul.f32 0.125, %v1020_v47 }
 0x2bd   : > { %1754 = vrcp.f32 %v1020_v47  ;;  %v2213_v34 = vmax.f32 %v1015_v62, %v1016_v40 }
 0x2be   : > { %1756 = vrcp.f32 %v1021_v1 }
 0x2bf   : > { %1758 = vrcp.f32 %v1022_v29  ;;  %v1025_v57 = vmax.f32 %v2213_v34, 1e-05 }
 0x2c0   : > { %1760 = vrcp.f32 %v1023_v4 }
 0x2c1   : > { %1762 = vrcp.f32 %v1025_v57 }
 0x2c7   : > { %v1749_v45 = vpop.eup %1748 }
 0x2c8   : > { %v1751_v2 = vpop.eup %1750  ;;  %v1039_v6 = vmul.f32 8.0, %v1749_v45 }
 0x2c9   : > { %v1753_v7 = vpop.eup %1752  ;;  %v1027_v35 = vmul.f32 8.0, %v1751_v2 }
 0x2ca   : > { %v1755_v5 = vpop.eup %1754  ;;  %v2226_v63 = vmul.f32 %v1039_v6, %v2168_v50  ;;  %v1029_v25 = vmul.f32 8.0, %v1753_v7 }
 0x2cb   : > { %v1042_v10 = vmul.f32 %v1027_v35, %v2170_v48  ;;  %v1031_v26 = vmul.f32 8.0, %v1755_v5  ;;  %v1757_v43 = vpop.eup %1756 }
 0x2cc   : > { %v1688_v36 = vcvt.f32.s32 %v2226_v63  ;;  %v1043_v38 = vmul.f32 %v1029_v25, %v2172_v46  ;;  %v1759_v50 = vpop.eup %1758  ;;  %v1686_v27 = vand.u32 2147483647, %v2226_v63  ;;  %v1691_v33 = vand.u32 2147483648, %v2226_v63 }
 0x2cd   : > { %v1638_v9 = vand.u32 2147483647, %v1042_v10  ;;  %v1640_v12 = vcvt.f32.s32 %v1042_v10  ;;  %v1044_v58 = vmul.f32 %v1031_v26, %v2174_v44  ;;  %v1643_v15 = vand.u32 2147483648, %v1042_v10  ;;  %v1761_v18 = vpop.eup %1760 }
 0x2ce   : > { %v1689_v13 = vcvt.s32.f32 %v1688_v36  ;;  %v1648_v32 = vcvt.f32.s32 %v1043_v38  ;;  %v1646_v48 = vand.u32 2147483647, %v1043_v38  ;;  %v1033_v17 = vmul.f32 8.0, %v1757_v43  ;;  %v1763_v22 = vpop.eup %1762 }
 0x2cf   : > { %v1641_v24 = vcvt.s32.f32 %v1640_v12  ;;  %v1654_v59 = vand.u32 2147483647, %v1044_v58  ;;  %v1656_v11 = vcvt.f32.s32 %v1044_v58  ;;  %vm2234_vm0 = vcmp.lt.f32.partialorder %v1638_v9, 8388608.0 }
 0x2d0   : > { %v1649_v46 = vcvt.s32.f32 %v1648_v32  ;;  %v1690_v30 = vand.u32 2147483647, %v1689_v13  ;;  %v1651_v19 = vand.u32 2147483648, %v1043_v38  ;;  %v1035_v21 = vmul.f32 8.0, %v1759_v50 }
 0x2d1   : > { %v1642_v44 = vand.u32 2147483647, %v1641_v24  ;;  %v1657_v3 = vcvt.s32.f32 %v1656_v11  ;;  %vm1647_vm5 = vcmp.lt.f32.partialorder %v1646_v48, 8388608.0  ;;  %vm2238_vm6 = vcmp.lt.f32.partialorder %v1654_v59, 8388608.0 }
 0x2d2   : > { %v1650_v37 = vand.u32 2147483647, %v1649_v46  ;;  %v1045_v39 = vmul.f32 %v1033_v17, %v2176_v42  ;;  %v1659_v28 = vand.u32 2147483648, %v1044_v58  ;;  %v1046_v47 = vmul.f32 %v1035_v21, %v2178_v49 }
 0x2d3   : > { %v1644_v23 = vor.u32 %v1643_v15, %v1642_v44  ;;  %v1658_v53 = vand.u32 2147483647, %v1657_v3  ;;  %v1692_v61 = vor.u32 %v1691_v33, %v1690_v30  ;;  %v1037_v45 = vmul.f32 8.0, %v1761_v18 }
 0x2d4   : > { %v1652_v56 = vor.u32 %v1651_v19, %v1650_v37  ;;  %v1664_v40 = vcvt.f32.s32 %v1045_v39  ;;  %v1041_v35 = vmul.f32 8.0, %v1763_v22  ;;  %v1662_v25 = vand.u32 2147483647, %v1045_v39 }
 0x2d5   : > { %v1645_v62 = vsel %vm2234_vm0, %v1644_v23, %v1042_v10  ;;  %v1660_v7 = vor.u32 %v1659_v28, %v1658_v53  ;;  %v1672_v36 = vcvt.f32.s32 %v1046_v47  ;;  %v1667_v12 = vand.u32 2147483648, %v1045_v39 }
 0x2d6   : > { %v1058_v2 = vmax.f32 %v1645_v62, -8.0  ;;  %v1653_v6 = vsel %vm1647_vm5, %v1652_v56, %v1043_v38  ;;  %v1665_v26 = vcvt.s32.f32 %v1664_v40  ;;  %v1670_v49 = vand.u32 2147483647, %v1046_v47 }
 0x2d7   : > { %v1059_v5 = vmax.f32 %v1653_v6, -8.0  ;;  %v1661_v9 = vsel %vm2238_vm6, %v1660_v7, %v1044_v58  ;;  %v1673_v10 = vcvt.s32.f32 %v1672_v36  ;;  %v1675_v24 = vand.u32 2147483648, %v1046_v47 }
 0x2d8   : > { %v1066_v42 = vmin.f32 %v1058_v2, 7.0  ;;  %v1060_v13 = vmax.f32 %v1661_v9, -8.0  ;;  %v1666_v32 = vand.u32 2147483647, %v1665_v26  ;;  %v1047_v38 = vmul.f32 %v1037_v45, %v2180_v52 }
 0x2d9   : > { %v1067_v43 = vmin.f32 %v1059_v5, 7.0  ;;  %v1049_v48 = vmul.f32 %v1041_v35, %v2188_v60  ;;  %v1674_v46 = vand.u32 2147483647, %v1673_v10  ;;  %vm1663_vm7 = vcmp.lt.f32.partialorder %v1662_v25, 8388608.0 }
 0x2da   : > { %v1082_v50 = vmul.f32 %v1074_v55, %v1066_v42  ;;  %v1068_v33 = vmin.f32 %v1060_v13, 7.0  ;;  %v1668_v15 = vor.u32 %v1667_v12, %v1666_v32  ;;  %v1680_v58 = vcvt.f32.s32 %v1047_v38 }
 0x2db   : > { %v1083_v59 = vmul.f32 %v1075_v14, %v1067_v43  ;;  %vm2251_vm8 = vcmp.lt.f32.partialorder %v1686_v27, 8388608.0  ;;  %v1676_v16 = vor.u32 %v1675_v24, %v1674_v46  ;;  %vm1671_vm9 = vcmp.lt.f32.partialorder %v1670_v49, 8388608.0 }
 0x2dc   : > { %1496 = vmatprep.mubr.msk.f32.mxu0 %vm290_vm1, %v1082_v50  ;;  %v1084_v55 = vmul.f32 %v1076_v8, %v1068_v33  ;;  %v1669_v30 = vsel %vm1663_vm7, %v1668_v15, %v1045_v39  ;;  %v1681_v60 = vcvt.s32.f32 %v1680_v58  ;;  %v1693_v14 = vsel %vm2251_vm8, %v1692_v61, %v2226_v63 }
 0x2dd   : > { %1497 = vmatmul.mubr.msk.f32.vlgmr.msra.gmra.mxu0 %vm290_vm1, %v1083_v59  ;;  %v1061_v52 = vmax.f32 %v1669_v30, -8.0  ;;  %v1077_v27 = vmul.f32 0.125, %v1021_v1  ;;  %v1677_v44 = vsel %vm1671_vm9, %v1676_v16, %v1046_v47  ;;  %v1678_v17 = vand.u32 2147483647, %v1047_v38 }
 0x2de   : > { %1499 = vmatprep.mubr.msk.f32.mxu0 %vm290_vm1, %v1084_v55  ;;  %v1696_v18 = vcvt.f32.s32 %v1049_v48  ;;  %v1062_v19 = vmax.f32 %v1677_v44, -8.0  ;;  %v1682_v8 = vand.u32 2147483647, %v1681_v60  ;;  %v1683_v3 = vand.u32 2147483648, %v1047_v38 }
 0x2df   : > { %v1069_v37 = vmin.f32 %v1061_v52, 7.0  ;;  %v1078_v21 = vmul.f32 0.125, %v1022_v29  ;;  %v1064_v22 = vmax.f32 %v1693_v14, -8.0  ;;  %v1694_v56 = vand.u32 2147483647, %v1049_v48 }
 0x2e0   : > { %v1697_v23 = vcvt.s32.f32 %v1696_v18  ;;  %v1070_v39 = vmin.f32 %v1062_v19, 7.0  ;;  %v1684_v63 = vor.u32 %v1683_v3, %v1682_v8  ;;  %vm1679_vm10 = vcmp.lt.f32.partialorder %v1678_v17, 8388608.0 }
 0x2e1   : > { %v1085_v31 = vmul.f32 %v1077_v27, %v1069_v37  ;;  %v1699_v41 = vand.u32 2147483648, %v1049_v48  ;;  %v1072_v62 = vmin.f32 %v1064_v22, 7.0  ;;  %vm1695_vm11 = vcmp.lt.f32.partialorder %v1694_v56, 8388608.0 }
 0x2e2   : > { %v1698_v53 = vand.u32 2147483647, %v1697_v23  ;;  %v1086_v1 = vmul.f32 %v1078_v21, %v1070_v39  ;;  %v1685_v28 = vsel %vm1679_vm10, %v1684_v63, %v1047_v38  ;;  %v1079_v29 = vmul.f32 0.125, %v1023_v4  ;;  %v1796_v63 = vld [vmem:[%s1892_s26 + $0x8] sm:$0xff] }
 0x2e3   : > { %1500 = vmatmul.mubr.msk.f32.gmra.mxu0 %vm290_vm1, %v1085_v31  ;;  %v1063_v47 = vmax.f32 %v1685_v28, -8.0  ;;  %v1080_v45 = vmul.f32 0.125, %v1024_v51  ;;  %v1081_v5 = vmul.f32 0.125, %v1025_v57  ;;  %v2275_v44 = vstv %s1263_s6 }
 0x2e4   : > { %v1700_v61 = vor.u32 %v1699_v41, %v1698_v53  ;;  %1502 = vmatprep.mubr.msk.f32.mxu0 %vm290_vm1, %v1086_v1  ;;  %v1797_v53 = vld [vmem:[%s1892_s26 + $0x48] sm:$0xff] }
 0x2e5   : > { %v1071_v0 = vmin.f32 %v1063_v47, 7.0  ;;  %v1088_v7 = vmul.f32 %v1080_v45, %v1072_v62  ;;  %v1798_v1 = vld [vmem:[%s1892_s26 + $0x88] sm:$0xff] }
 0x2e6   : > { %v1701_v40 = vsel %vm1695_vm11, %v1700_v61, %v1049_v48  ;;  %v1799_v47 = vld [vmem:[%s1892_s26 + $0xc8] sm:$0xff] }
 0x2e7   : > { %v1065_v2 = vmax.f32 %v1701_v40, -8.0  ;;  %v1087_v6 = vmul.f32 %v1079_v29, %v1071_v0  ;;  %v1800_v40 = vld [vmem:[%s1892_s26] sm:$0xff] }
 0x2e9   : > { %v1073_v35 = vmin.f32 %v1065_v2, 7.0  ;;  %1503 = vmatmul.mubr.msk.f32.gmra.mxu0 %vm290_vm1, %v1087_v6  ;;  %v1801_v2 = vld [vmem:[%s1892_s26 + $0x40] sm:$0xff] }
 0x2ea   : > { %1505 = vmatprep.mubr.msk.f32.mxu0 %vm290_vm1, %v1088_v7  ;;  %v1802_v7 = vld [vmem:[%s1892_s26 + $0x80] sm:$0xff] }
 0x2eb   : > { %v1089_v25 = vmul.f32 %v1081_v5, %v1073_v35  ;;  %v1803_v5 = vld [vmem:[%s1892_s26 + $0xc0] sm:$0xff] }
 0x2ed   : > { %1506 = vmatmul.mubr.msk.f32.gmra.mxu0 %vm290_vm1, %v1089_v25 }
 0x39d   : > { %v1498_v54 = vpop.f32.mrf.mxu0 }
 0x39e   : > { %v1224_v4 = vsub.f32 0.0, %v1498_v54 }
 0x39f   : > { %v1184_v26 = vpop.f32.mrf.mxu0 }
 0x3a0   : > { %v1233_v36 = vmul.f32 1.442695, %v1224_v4  ;;  %v1223_v20 = vsub.f32 0.0, %v1184_v26 }
 0x3a2   : > { %1764 = vpow2.f32 %v1233_v36  ;;  %v1231_v51 = vmul.f32 1.442695, %v1223_v20 }
 0x3a3   : > { %v1501_v42 = vpop.f32.mrf.mxu0 }
 0x3a4   : > { %1766 = vpow2.f32 %v1231_v51  ;;  %v1226_v9 = vsub.f32 0.0, %v1501_v42  ;;  %v1804_v51 = vld [vmem:[%s1892_s26 + $0x18] sm:$0xff] }
 0x3a5   : > { %v1194_v12 = vpop.f32.mrf.mxu0 }
 0x3a6   : > { %v1237_v49 = vmul.f32 1.442695, %v1226_v9  ;;  %v1225_v43 = vsub.f32 0.0, %v1194_v12  ;;  %v1805_v9 = vld [vmem:[%s1892_s26 + $0x58] sm:$0xff] }
 0x3a8   : > { %1768 = vpow2.f32 %v1237_v49  ;;  %v1235_v34 = vmul.f32 1.442695, %v1225_v43  ;;  %v1806_v49 = vld [vmem:[%s1892_s26 + $0x98] sm:$0xff] }
 0x3a9   : > { %v1504_v57 = vpop.f32.mrf.mxu0 }
 0x3aa   : > { %1770 = vpow2.f32 %v1235_v34  ;;  %v1228_v13 = vsub.f32 0.0, %v1504_v57  ;;  %v1807_v34 = vld [vmem:[%s1892_s26 + $0xd8] sm:$0xff] }
 0x3ab   : > { %v1204_v32 = vpop.f32.mrf.mxu0 }
 0x3ac   : > { %v1241_v10 = vmul.f32 1.442695, %v1228_v13  ;;  %v1227_v50 = vsub.f32 0.0, %v1204_v32  ;;  %v1808_v32 = vld [vmem:[%s1892_s26 + $0x10] sm:$0xff] }
 0x3ad   : > { %v1507_v38 = vpop.f32.mrf.mxu0 }
 0x3ae   : > { %1772 = vpow2.f32 %v1241_v10  ;;  %v1239_v59 = vmul.f32 1.442695, %v1227_v50  ;;  %v1230_v33 = vsub.f32 0.0, %v1507_v38  ;;  %v1809_v50 = vld [vmem:[%s1892_s26 + $0x50] sm:$0xff] }
 0x3af   : > { %v1765_v24 = vpop.eup %1764  ;;  %v1214_v46 = vpop.f32.mrf.mxu0  ;;  %v1810_v38 = vld [vmem:[%s1892_s26 + $0x90] sm:$0xff] }
 0x3b0   : > { %v1248_v48 = vadd.f32 1.0, %v1765_v24  ;;  %v1245_v11 = vmul.f32 1.442695, %v1230_v33  ;;  %v1229_v55 = vsub.f32 0.0, %v1214_v46 }
 0x3b1   : > { %v1767_v15 = vpop.eup %1766 }
 0x3b2   : > { %1774 = vrcp.f32 %v1248_v48  ;;  %v1247_v58 = vadd.f32 1.0, %v1767_v15  ;;  %v1243_v30 = vmul.f32 1.442695, %v1229_v55 }
 0x3b3   : > { %1776 = vpow2.f32 %v1239_v59  ;;  %v1811_v59 = vld [vmem:[%s1892_s26 + $0xd0] sm:$0xff] }
 0x3b4   : > { %1778 = vrcp.f32 %v1247_v58 }
 0x3b5   : > { %1780 = vpow2.f32 %v1245_v11  ;;  %v1769_v16 = vpop.eup %1768 }
 0x3b6   : > { %1782 = vpow2.f32 %v1243_v30  ;;  %v1250_v52 = vadd.f32 1.0, %v1769_v16  ;;  %v1812_v30 = vld [vmem:[%s1892_s26 + $0x28] sm:$0xff] }
 0x3b7   : > { %v1771_v60 = vpop.eup %1770 }
 0x3b8   : > { %1784 = vrcp.f32 %v1250_v52  ;;  %v1249_v14 = vadd.f32 1.0, %v1771_v60  ;;  %v1813_v52 = vld [vmem:[%s1892_s26 + $0x68] sm:$0xff] }
 0x3ba   : > { %1786 = vrcp.f32 %v1249_v14  ;;  %v1814_v14 = vld [vmem:[%s1892_s26 + $0xa8] sm:$0xff] }
 0x3bb   : > { %v1773_v27 = vpop.eup %1772 }
 0x3bc   : > { %v1252_v17 = vadd.f32 1.0, %v1773_v27 }
 0x3be   : > { %1788 = vrcp.f32 %v1252_v17  ;;  %v1815_v17 = vld [vmem:[%s1892_s26 + $0xe8] sm:$0xff] }
 0x3bf   : > { %v1775_v18 = vpop.eup %1774 }
 0x3c0   : > { %v1777_v37 = vpop.eup %1776  ;;  %v1266_v19 = vmul.f32 %v1775_v18, %v2275_v44 }
 0x3c1   : > { %v1779_v8 = vpop.eup %1778  ;;  %v1251_v3 = vadd.f32 1.0, %v1777_v37 }
 0x3c2   : > { %v1781_v21 = vpop.eup %1780  ;;  %v1274_v22 = vadd.f32 1.0, %v1266_v19  ;;  %v1265_v23 = vmul.f32 %v1779_v8, %v2275_v44 }
 0x3c3   : > { %v1783_v31 = vpop.eup %1782  ;;  %1790 = vrcp.f32 %v1251_v3  ;;  %v1254_v39 = vadd.f32 1.0, %v1781_v21  ;;  %v1816_v3 = vld [vmem:[%s1892_s26 + $0x20] sm:$0xff] }
 0x3c4   : > { %v1282_v56 = vmul.f32 %v1796_v63, %v1274_v22  ;;  %v1290_v41 = vmul.f32 %v1797_v53, %v1274_v22  ;;  %v1298_v28 = vmul.f32 %v1798_v1, %v1274_v22  ;;  %v1306_v61 = vmul.f32 %v1799_v47, %v1274_v22  ;;  %v1817_v22 = vld [vmem:[%s1892_s26 + $0x60] sm:$0xff]  ;;  %v1820_v1 = vld [vmem:[%s1892_s26 + $0x38] sm:$0xff] }
 0x3c5   : > { %v1273_v62 = vadd.f32 1.0, %v1265_v23  ;;  %1792 = vrcp.f32 %v1254_v39  ;;  %v1253_v0 = vadd.f32 1.0, %v1783_v31  ;;  %v1785_v29 = vpop.eup %1784  ;;  %v1818_v31 = vld [vmem:[%s1892_s26 + $0xa0] sm:$0xff]  ;;  %v1821_v47 = vld [vmem:[%s1892_s26 + $0x78] sm:$0xff] }
 0x3c6   : > { %1314 = vst.msk [vmem:[%s2284_s9 + $0x8] sm:$0xff] %vm290_vm1, %v1282_v56  ;;  %1322 = vst.msk [vmem:[%s2284_s9 + $0x48] sm:$0xff] %vm290_vm1, %v1290_v41  ;;  %v1268_v4 = vmul.f32 %v1785_v29, %v2275_v44  ;;  %v1819_v63 = vld [vmem:[%s1892_s26 + $0xe0] sm:$0xff] }
 0x3c7   : > { %1330 = vst.msk [vmem:[%s2284_s9 + $0x88] sm:$0xff] %vm290_vm1, %v1298_v28  ;;  %1338 = vst.msk [vmem:[%s2284_s9 + $0xc8] sm:$0xff] %vm290_vm1, %v1306_v61  ;;  %v1281_v45 = vmul.f32 %v1800_v40, %v1273_v62  ;;  %v1289_v6 = vmul.f32 %v1801_v2, %v1273_v62  ;;  %v1297_v35 = vmul.f32 %v1802_v7, %v1273_v62  ;;  %v1787_v54 = vpop.eup %1786  ;;  %1794 = vrcp.f32 %v1253_v0  ;;  %v1823_v0 = vld [vmem:[%s1892_s26 + $0xf8] sm:$0xff] }
 0x3c8   : > { %v1305_v25 = vmul.f32 %v1803_v5, %v1273_v62  ;;  %v1267_v26 = vmul.f32 %v1787_v54, %v2275_v44  ;;  %v1276_v36 = vadd.f32 1.0, %v1268_v4  ;;  %v1822_v62 = vld [vmem:[%s1892_s26 + $0xb8] sm:$0xff] }
 0x3c9   : > { %1313 = vst.msk [vmem:[%s2284_s9] sm:$0xff] %vm290_vm1, %v1281_v45  ;;  %1321 = vst.msk [vmem:[%s2284_s9 + $0x40] sm:$0xff] %vm290_vm1, %v1289_v6  ;;  %v1824_v45 = vld [vmem:[%s1892_s26 + $0x30] sm:$0xff] }
 0x3ca   : > { %1329 = vst.msk [vmem:[%s2284_s9 + $0x80] sm:$0xff] %vm290_vm1, %v1297_v35  ;;  %1337 = vst.msk [vmem:[%s2284_s9 + $0xc0] sm:$0xff] %vm290_vm1, %v1305_v25  ;;  %v1275_v20 = vadd.f32 1.0, %v1267_v26  ;;  %v1284_v42 = vmul.f32 %v1804_v51, %v1276_v36  ;;  %v1292_v12 = vmul.f32 %v1805_v9, %v1276_v36  ;;  %v1300_v43 = vmul.f32 %v1806_v49, %v1276_v36  ;;  %v1825_v6 = vld [vmem:[%s1892_s26 + $0x70] sm:$0xff] }
 0x3cb   : > { %v1308_v57 = vmul.f32 %v1807_v34, %v1276_v36  ;;  %v1789_v13 = vpop.eup %1788  ;;  %v1826_v35 = vld [vmem:[%s1892_s26 + $0xb0] sm:$0xff] }
 0x3cc   : > { %v1283_v10 = vmul.f32 %v1808_v32, %v1275_v20  ;;  %v1291_v24 = vmul.f32 %v1809_v50, %v1275_v20  ;;  %v1299_v48 = vmul.f32 %v1810_v38, %v1275_v20  ;;  %v1307_v33 = vmul.f32 %v1811_v59, %v1275_v20  ;;  %1316 = vst.msk [vmem:[%s2284_s9 + $0x18] sm:$0xff] %vm290_vm1, %v1284_v42  ;;  %v1827_v25 = vld [vmem:[%s1892_s26 + $0xf0] sm:$0xff] }
 0x3cd   : > { %1324 = vst.msk [vmem:[%s2284_s9 + $0x58] sm:$0xff] %vm290_vm1, %v1292_v12  ;;  %1332 = vst.msk [vmem:[%s2284_s9 + $0x98] sm:$0xff] %vm290_vm1, %v1300_v43  ;;  %v1270_v15 = vmul.f32 %v1789_v13, %v2275_v44 }
 0x3ce   : > { %1340 = vst.msk [vmem:[%s2284_s9 + $0xd8] sm:$0xff] %vm290_vm1, %v1308_v57  ;;  %1315 = vst.msk [vmem:[%s2284_s9 + $0x10] sm:$0xff] %vm290_vm1, %v1283_v10 }
 0x3cf   : > { %1323 = vst.msk [vmem:[%s2284_s9 + $0x50] sm:$0xff] %vm290_vm1, %v1291_v24  ;;  %1331 = vst.msk [vmem:[%s2284_s9 + $0x90] sm:$0xff] %vm290_vm1, %v1299_v48  ;;  %v1278_v58 = vadd.f32 1.0, %v1270_v15 }
 0x3d0   : > { %1339 = vst.msk [vmem:[%s2284_s9 + $0xd0] sm:$0xff] %vm290_vm1, %v1307_v33  ;;  %v1791_v46 = vpop.eup %1790 }
 0x3d1   : > { %v1269_v11 = vmul.f32 %v1791_v46, %v2275_v44  ;;  %v1286_v16 = vmul.f32 %v1812_v30, %v1278_v58  ;;  %v1294_v60 = vmul.f32 %v1813_v52, %v1278_v58  ;;  %v1302_v27 = vmul.f32 %v1814_v14, %v1278_v58 }
 0x3d2   : > { %v1793_v55 = vpop.eup %1792  ;;  %v1310_v18 = vmul.f32 %v1815_v17, %v1278_v58 }
 0x3d3   : > { %v1277_v37 = vadd.f32 1.0, %v1269_v11  ;;  %v1272_v19 = vmul.f32 %v1793_v55, %v2275_v44  ;;  %1318 = vst.msk [vmem:[%s2284_s9 + $0x28] sm:$0xff] %vm290_vm1, %v1286_v16  ;;  %1326 = vst.msk [vmem:[%s2284_s9 + $0x68] sm:$0xff] %vm290_vm1, %v1294_v60 }
 0x3d4   : > { %1334 = vst.msk [vmem:[%s2284_s9 + $0xa8] sm:$0xff] %vm290_vm1, %v1302_v27  ;;  %1342 = vst.msk [vmem:[%s2284_s9 + $0xe8] sm:$0xff] %vm290_vm1, %v1310_v18  ;;  %v1795_v8 = vpop.eup %1794 }
 0x3d5   : > { %v1285_v21 = vmul.f32 %v1816_v3, %v1277_v37  ;;  %v1293_v23 = vmul.f32 %v1817_v22, %v1277_v37  ;;  %v1301_v39 = vmul.f32 %v1818_v31, %v1277_v37  ;;  %v1309_v56 = vmul.f32 %v1819_v63, %v1277_v37 }
 0x3d6   : > { %v1280_v53 = vadd.f32 1.0, %v1272_v19  ;;  %v1271_v41 = vmul.f32 %v1795_v8, %v2275_v44 }
 0x3d7   : > { %1317 = vst.msk [vmem:[%s2284_s9 + $0x20] sm:$0xff] %vm290_vm1, %v1285_v21  ;;  %1325 = vst.msk [vmem:[%s2284_s9 + $0x60] sm:$0xff] %vm290_vm1, %v1293_v23 }
 0x3d8   : > { %1333 = vst.msk [vmem:[%s2284_s9 + $0xa0] sm:$0xff] %vm290_vm1, %v1301_v39  ;;  %1341 = vst.msk [vmem:[%s2284_s9 + $0xe0] sm:$0xff] %vm290_vm1, %v1309_v56  ;;  %v1288_v28 = vmul.f32 %v1820_v1, %v1280_v53  ;;  %v1296_v61 = vmul.f32 %v1821_v47, %v1280_v53  ;;  %v1304_v44 = vmul.f32 %v1822_v62, %v1280_v53  ;;  %v1279_v40 = vadd.f32 1.0, %v1271_v41 }
 0x3d9   : > { %v1312_v29 = vmul.f32 %v1823_v0, %v1280_v53 }
 0x3da   : > { %1320 = vst.msk [vmem:[%s2284_s9 + $0x38] sm:$0xff] %vm290_vm1, %v1288_v28  ;;  %1328 = vst.msk [vmem:[%s2284_s9 + $0x78] sm:$0xff] %vm290_vm1, %v1296_v61  ;;  %v1287_v2 = vmul.f32 %v1824_v45, %v1279_v40  ;;  %v1295_v7 = vmul.f32 %v1825_v6, %v1279_v40  ;;  %v1303_v5 = vmul.f32 %v1826_v35, %v1279_v40 }
 0x3db   : > { %1336 = vst.msk [vmem:[%s2284_s9 + $0xb8] sm:$0xff] %vm290_vm1, %v1304_v44  ;;  %1344 = vst.msk [vmem:[%s2284_s9 + $0xf8] sm:$0xff] %vm290_vm1, %v1312_v29  ;;  %v1311_v54 = vmul.f32 %v1827_v25, %v1279_v40 }
 0x3dc   : > { %1319 = vst.msk [vmem:[%s2284_s9 + $0x30] sm:$0xff] %vm290_vm1, %v1287_v2  ;;  %1327 = vst.msk [vmem:[%s2284_s9 + $0x70] sm:$0xff] %vm290_vm1, %v1295_v7 }
 0x3dd   : > { %1335 = vst.msk [vmem:[%s2284_s9 + $0xb0] sm:$0xff] %vm290_vm1, %v1303_v5  ;;  %1343 = vst.msk [vmem:[%s2284_s9 + $0xf0] sm:$0xff] %vm290_vm1, %v1311_v54 }
 0x3de PF: > { %s16_s20 = sadd.s32 1, %s1834_s20  }
 0x3df   : > { %p13_p4 = scmp.ge.s32.totalorder %s16_s20, 4  }
 0x3e1   :  { %15 = sbr.rel (!%p13_p4) target bundleno = 2 (0x2), region = 70 }

</bundles_post_ra>
